<compile_context>
chip_gen: v7x
topology: tpu7x:2x2x1
jax: 0.10.0
libtpu: 0.0.40
codegen_flags: <defaults>
</compile_context>

<pallas_src>
import functools
import math
import types

import jax
import jax.numpy as jnp
from jax.experimental import pallas as pl
from jax.experimental.pallas import tpu as pltpu


def _ce_sum(logits, targets):
    """Sum over batch of cross-entropy(logits, argmax(targets)); first-index tie-break."""
    B, C = logits.shape
    idx = jax.lax.broadcasted_iota(jnp.int32, (B, C), 1)
    tmax = jnp.max(targets, axis=1, keepdims=True)
    big = jnp.int32(2**31 - 1)
    label_idx = jnp.min(jnp.where(targets == tmax, idx, big), axis=1, keepdims=True)
    onehot = (idx == label_idx).astype(logits.dtype)
    lmax = jnp.max(logits, axis=1, keepdims=True)
    lse = lmax + jnp.log(jnp.sum(jnp.exp(logits - lmax), axis=1, keepdims=True))
    sel = jnp.sum(onehot * logits, axis=1, keepdims=True)
    return jnp.sum(lse - sel)


def _loss_kernel(mel_out_ref, mel_post_ref, mel_tgt_ref,
                 gate_out_ref, gate_tgt_ref,
                 spk_out_ref, spk_tgt_ref,
                 aug_out_ref, aug_tgt_ref,
                 s_mu_ref, s_lv_ref, r_mu_ref, r_lv_ref,
                 align_ref, g_ref,
                 o_ref,
                 acc_mel, acc_gate, acc_aln,
                 *, kt_mel, kt_aln):
    b = pl.program_id(0)           # batch split ("parallel")
    k = pl.program_id(1)           # time chunk ("arbitrary", reduction)
    k_last = pl.num_programs(1) - 1
    f32 = jnp.float32

    @pl.when(k == 0)
    def _init():
        acc_mel[...] = jnp.zeros_like(acc_mel)
        acc_gate[...] = jnp.zeros_like(acc_gate)
        acc_aln[...] = jnp.zeros_like(acc_aln)

    # ---- mel squared-error partials (this batch split, this time chunk) ----
    @pl.when(k < kt_mel)
    def _mel():
        tgt = mel_tgt_ref[...].astype(f32)
        d1 = mel_out_ref[...].astype(f32) - tgt
        d2 = mel_post_ref[...].astype(f32) - tgt
        # Reduce only the cheap leading batch axis; keep a lane-dense
        # (n_mel, TCM) partial so the expensive cross-lane reduction happens
        # exactly once, in the finalize branch.
        acc_mel[...] += jnp.sum(d1 * d1 + d2 * d2, axis=0)

    # ---- gate BCE-with-logits partials, lane-dense (B, TCM) tiles ----
    # Gate is ~1/n_mel of the mel traffic; it is not batch-split, so only the
    # first split accumulates it (other splits keep a zero accumulator).
    @pl.when(jnp.logical_and(k < kt_mel, b == 0))
    def _gate():
        x = gate_out_ref[...].astype(f32)
        y = gate_tgt_ref[...].astype(f32)
        acc_gate[...] += (jnp.maximum(x, 0.0) - x * y
                          + jnp.log(1.0 + jnp.exp(-jnp.abs(x))))

    # ---- guided-attention partials: reduce over batch, then weight by g ----
    @pl.when(k < kt_aln)
    def _aln():
        a = align_ref[...].astype(f32)
        acc_aln[...] += jnp.sum(a, axis=0) * g_ref[...].astype(f32)

    # ---- finalize: one cross-lane reduction per term, lane-dense store ----
    @pl.when(k == k_last)
    def _finalize():
        mel_sum = jnp.sum(acc_mel[...])
        gate_sum = jnp.sum(acc_gate[...])
        aln_sum = jnp.sum(acc_aln[...])

        # Small terms are computed on the full (untiled) batch; mask them so
        # only split 0 contributes when the wrapper sums the partials.
        is_b0 = (b == 0).astype(f32)
        spk = is_b0 * _ce_sum(spk_out_ref[...].astype(f32),
                              spk_tgt_ref[...].astype(f32))
        aug = is_b0 * _ce_sum(aug_out_ref[...].astype(f32),
                              aug_tgt_ref[...].astype(f32))
        s_mu = s_mu_ref[...].astype(f32)
        s_lv = s_lv_ref[...].astype(f32)
        r_mu = r_mu_ref[...].astype(f32)
        r_lv = r_lv_ref[...].astype(f32)
        skl = is_b0 * (-0.5 * jnp.sum(1.0 + s_lv - s_mu * s_mu - jnp.exp(s_lv)))
        rkl = is_b0 * (-0.5 * jnp.sum(1.0 + r_lv - r_mu * r_mu - jnp.exp(r_lv)))

        row = jax.lax.broadcasted_iota(jnp.int32, (8, 128), 0)
        out = jnp.zeros((8, 128), f32)
        out = jnp.where(row == 0, mel_sum, out)
        out = jnp.where(row == 1, gate_sum, out)
        out = jnp.where(row == 2, spk, out)
        out = jnp.where(row == 3, aug, out)
        out = jnp.where(row == 4, skl, out)
        out = jnp.where(row == 5, rkl, out)
        out = jnp.where(row == 6, aln_sum, out)
        o_ref[0] = out


def _pick_chunk(dim, target=512):
    """Largest multiple of 128 <= target that divides dim; else the full dim."""
    if dim % 128 == 0:
        c = min(dim, max(128, (target // 128) * 128))
        while c >= 128:
            if dim % c == 0:
                return c
            c -= 128
    return dim


def kl_anneal_function(anneal_function, step, k, x0):
    if anneal_function == 'logistic':
        if step > 10000:
            step = step - step // 10000 * 10000
        return float(1.0 / (1.0 + math.exp(-k * (step - x0))))
    elif anneal_function == 'linear':
        return min(1, step / x0)
    elif anneal_function == 'constant':
        return 0.001


def tacotron2_loss(model_output, targets, step, hparams, *, time_chunk=512):
    mel_target, gate_target, speaker_target, aug_target = targets
    (mel_out, mel_out_postnet, gate_out, alignment,
     s_mu, s_lv, r_mu, r_lv, speaker_out, aug_out) = model_output

    B, n_mel, T_mel = mel_out.shape
    _, N, T_aln = alignment.shape

    # Lane-dense gate layout (B, T_mel); mathematically identical to the
    # reference's .view(-1, 1) since BCE mean is over all elements.
    gate_out = gate_out.reshape(B, T_mel)
    gate_target = gate_target.reshape(B, T_mel)

    # Guided-attention weight depends only on (N, T): precompute once.
    n_norm = (jnp.arange(N, dtype=jnp.float32) / float(N))[:, None]
    t_norm = (jnp.arange(T_aln, dtype=jnp.float32) / float(T_aln))[None, :]
    diff = n_norm - t_norm
    g = 1.0 - jnp.exp(-(diff * diff) / 0.4)

    # Tiling: time chunks for mel/gate and alignment, batch split for megacore.
    tcm = _pick_chunk(T_mel, time_chunk)
    tca = _pick_chunk(T_aln, time_chunk)
    kt_mel = T_mel // tcm
    kt_aln = T_aln // tca
    kt = max(kt_mel, kt_aln)
    nb = 2 if (B % 2 == 0 and B >= 2) else 1
    bp = B // nb

    mel_spec = pl.BlockSpec(
        (bp, n_mel, tcm), lambda b, k: (b, 0, jnp.minimum(k, kt_mel - 1)))
    gate_spec = pl.BlockSpec(
        (B, tcm), lambda b, k: (0, jnp.minimum(k, kt_mel - 1)))
    aln_spec = pl.BlockSpec(
        (bp, N, tca), lambda b, k: (b, 0, jnp.minimum(k, kt_aln - 1)))
    g_spec = pl.BlockSpec(
        (N, tca), lambda b, k: (0, jnp.minimum(k, kt_aln - 1)))

    def full_spec(x):
        nd = x.ndim
        return pl.BlockSpec(x.shape, lambda b, k: (0,) * nd)

    args = (mel_out, mel_out_postnet, mel_target,
            gate_out, gate_target,
            speaker_out, speaker_target,
            aug_out, aug_target,
            s_mu, s_lv, r_mu, r_lv,
            alignment, g)

    in_specs = [mel_spec, mel_spec, mel_spec,
                gate_spec, gate_spec,
                full_spec(speaker_out), full_spec(speaker_target),
                full_spec(aug_out), full_spec(aug_target),
                full_spec(s_mu), full_spec(s_lv), full_spec(r_mu), full_spec(r_lv),
                aln_spec, g_spec]

    # Advisory cost: this call is a long memory-bound streaming reduction.
    bytes_accessed = int(sum(int(x.size) * x.dtype.itemsize for x in args)
                         + nb * 8 * 128 * 4)
    flops = int(6 * mel_out.size + 6 * gate_out.size + 3 * alignment.size
                + 8 * (s_mu.size + r_mu.size)
                + 6 * (speaker_out.size + aug_out.size))
    transcendentals = int(gate_out.size + 2 * (s_mu.size + r_mu.size)
                          + speaker_out.size + aug_out.size)

    partials = pl.pallas_call(
        functools.partial(_loss_kernel, kt_mel=kt_mel, kt_aln=kt_aln),
        grid=(nb, kt),
        in_specs=in_specs,
        out_specs=pl.BlockSpec((1, 8, 128), lambda b, k: (b, 0, 0)),
        out_shape=jax.ShapeDtypeStruct((nb, 8, 128), jnp.float32),
        scratch_shapes=[pltpu.VMEM((n_mel, tcm), jnp.float32),
                        pltpu.VMEM((B, tcm), jnp.float32),
                        pltpu.VMEM((N, tca), jnp.float32)],
        compiler_params=pltpu.CompilerParams(
            dimension_semantics=("parallel", "arbitrary"),
            vmem_limit_bytes=48 * 1024 * 1024),
        cost_estimate=pl.CostEstimate(flops=flops,
                                      transcendentals=transcendentals,
                                      bytes_accessed=bytes_accessed),
    )(*args)

    sums = jnp.sum(partials[:, :, 0], axis=0)        # (8,)
    mel_loss = sums[0] / float(B * n_mel * T_mel)
    gate_loss = sums[1] / float(B * T_mel)
    speaker_loss = sums[2] / float(B)
    augment_loss = sums[3] / float(B)
    S_kl_loss = sums[4]
    R_kl_loss = sums[5]
    alignment_loss = jnp.abs(sums[6])

    S_kl_weight = kl_anneal_function(hparams.anneal_function, step,
                                     hparams.anneal_k, hparams.anneal_x0)
    R_kl_weight = kl_anneal_function(hparams.anneal_function, step,
                                     hparams.anneal_k, hparams.anneal_x0)

    tmp_loss = mel_loss + gate_loss
    total_loss = (10.0 * (mel_loss + gate_loss)
                  + 0.01 * (S_kl_loss * S_kl_weight + R_kl_loss * R_kl_weight)
                  + 0.1 * speaker_loss + 0.1 * augment_loss)
    return (total_loss, tmp_loss, S_kl_loss, R_kl_loss,
            speaker_loss, augment_loss, alignment_loss)


def _jax_reference(model_output, targets, step, hparams):
    """Pure-JAX mirror of the PyTorch reference, for correctness checking."""
    mel_target, gate_target, speaker_target, aug_target = targets
    (mel_out, mel_out_postnet, gate_out, alignment,
     s_mu, s_lv, r_mu, r_lv, speaker_out, aug_out) = model_output
    mel_loss = (jnp.mean((mel_out - mel_target) ** 2)
                + jnp.mean((mel_out_postnet - mel_target) ** 2))
    x = gate_out.reshape(-1)
    y = gate_target.reshape(-1)
    gate_loss = jnp.mean(jnp.maximum(x, 0.0) - x * y
                         + jnp.log1p(jnp.exp(-jnp.abs(x))))

    def ce(logits, onehot):
        labels = jnp.argmax(onehot, axis=1)
        logp = jax.nn.log_softmax(logits, axis=1)
        return -jnp.mean(jnp.take_along_axis(logp, labels[:, None], axis=1))

    speaker_loss = ce(speaker_out, speaker_target)
    augment_loss = ce(aug_out, aug_target)
    s_kl = -0.5 * jnp.sum(1.0 + s_lv - s_mu ** 2 - jnp.exp(s_lv))
    r_kl = -0.5 * jnp.sum(1.0 + r_lv - r_mu ** 2 - jnp.exp(r_lv))
    _, N, T = alignment.shape
    n = jnp.arange(N, dtype=jnp.float32)[:, None] / N
    t = jnp.arange(T, dtype=jnp.float32)[None, :] / T
    g = 1.0 - jnp.exp(-((n - t) ** 2) / 0.4)
    align_loss = jnp.abs(jnp.sum(alignment * g[None]))
    w = kl_anneal_function(hparams.anneal_function, step,
                           hparams.anneal_k, hparams.anneal_x0)
    total = (10.0 * (mel_loss + gate_loss) + 0.01 * (s_kl * w + r_kl * w)
             + 0.1 * speaker_loss + 0.1 * augment_loss)
    return (total, mel_loss + gate_loss, s_kl, r_kl,
            speaker_loss, augment_loss, align_loss)


if __name__ == "__main__":
    hparams = types.SimpleNamespace(
        anneal_function='logistic', anneal_lag=0, anneal_k=0.0025,
        anneal_x0=10000, anneal_upper=0.2)

    # Small but tiling-exercising shapes: 2 mel chunks of 512, 3 align chunks.
    B, n_mel, T_mel = 2, 8, 1024
    N, T = 8, 1536               # alignment (B, N, T)
    n_spk, n_aug, z_dim = 4, 5, 16

    key = jax.random.PRNGKey(0)
    ks = jax.random.split(key, 16)

    mel_target = jax.random.normal(ks[0], (B, n_mel, T_mel), jnp.float32)
    mel_out = jax.random.normal(ks[1], (B, n_mel, T_mel), jnp.float32)
    mel_out_postnet = jax.random.normal(ks[2], (B, n_mel, T_mel), jnp.float32)

    gate_target = (jax.random.uniform(ks[3], (B, T_mel)) > 0.5).astype(jnp.float32)
    gate_out = jax.random.normal(ks[4], (B, T_mel), jnp.float32)

    speaker_labels = jax.random.randint(ks[5], (B,), 0, n_spk)
    speaker_target = jax.nn.one_hot(speaker_labels, n_spk, dtype=jnp.float32)
    speaker_out = jax.random.normal(ks[6], (B, n_spk), jnp.float32)

    aug_labels = jax.random.randint(ks[7], (B,), 0, n_aug)
    aug_target = jax.nn.one_hot(aug_labels, n_aug, dtype=jnp.float32)
    aug_out = jax.random.normal(ks[8], (B, n_aug), jnp.float32)

    s_mu = jax.random.normal(ks[9], (B, z_dim), jnp.float32)
    s_lv = jax.random.normal(ks[10], (B, z_dim), jnp.float32)
    r_mu = jax.random.normal(ks[11], (B, z_dim), jnp.float32)
    r_lv = jax.random.normal(ks[12], (B, z_dim), jnp.float32)

    alignment = jax.nn.softmax(
        jax.random.normal(ks[13], (B, N, T), jnp.float32), axis=-1)

    model_output = (mel_out, mel_out_postnet, gate_out, alignment,
                    s_mu, s_lv, r_mu, r_lv, speaker_out, aug_out)
    targets = (mel_target, gate_target, speaker_target, aug_target)

    out = tacotron2_loss(model_output, targets, step=5000, hparams=hparams)
    out = jax.block_until_ready(out)

    ref = _jax_reference(model_output, targets, step=5000, hparams=hparams)
    ref = jax.block_until_ready(ref)
    for got, want in zip(out, ref):
        got_f, want_f = float(got), float(want)
        assert abs(got_f - want_f) <= 1e-3 + 1e-4 * abs(want_f), (got_f, want_f)

    print("KERNEL_OK")
</pallas_src>

<mosaic_0001>
module attributes {stable_mosaic.version = 11 : i64} {
  func.func @_loss_kernel(%arg0: i32, %arg1: i32, %arg2: memref<1x8x512xf32, #tpu.memory_space<vmem>>, %arg3: memref<1x8x512xf32, #tpu.memory_space<vmem>>, %arg4: memref<1x8x512xf32, #tpu.memory_space<vmem>>, %arg5: memref<2x512xf32, #tpu.memory_space<vmem>>, %arg6: memref<2x512xf32, #tpu.memory_space<vmem>>, %arg7: memref<2x4xf32, #tpu.memory_space<vmem>>, %arg8: memref<2x4xf32, #tpu.memory_space<vmem>>, %arg9: memref<2x5xf32, #tpu.memory_space<vmem>>, %arg10: memref<2x5xf32, #tpu.memory_space<vmem>>, %arg11: memref<2x16xf32, #tpu.memory_space<vmem>>, %arg12: memref<2x16xf32, #tpu.memory_space<vmem>>, %arg13: memref<2x16xf32, #tpu.memory_space<vmem>>, %arg14: memref<2x16xf32, #tpu.memory_space<vmem>>, %arg15: memref<1x8x512xf32, #tpu.memory_space<vmem>>, %arg16: memref<8x512xf32, #tpu.memory_space<vmem>>, %arg17: memref<1x8x128xf32, #tpu.memory_space<vmem>>, %arg18: memref<8x512xf32, #tpu.memory_space<vmem>>, %arg19: memref<2x512xf32, #tpu.memory_space<vmem>>, %arg20: memref<8x512xf32, #tpu.memory_space<vmem>>) attributes {dimension_semantics = [#tpu.dimension_semantics<parallel>, #tpu.dimension_semantics<arbitrary>], iteration_bounds = array<i64: 2, 3>, scalar_prefetch = 0 : i64, scratch_operands = 3 : i64, tpu.core_type = #tpu.core_type<tc>, window_params = [{transform_indices = @transform_0, window_bounds = array<i64: 1, 8, 512>}, {transform_indices = @transform_1, window_bounds = array<i64: 1, 8, 512>}, {transform_indices = @transform_2, window_bounds = array<i64: 1, 8, 512>}, {transform_indices = @transform_3, window_bounds = array<i64: 2, 512>}, {transform_indices = @transform_4, window_bounds = array<i64: 2, 512>}, {pipeline_mode = #tpu.pipeline_mode<synchronous>, transform_indices = @transform_5, window_bounds = array<i64: 2, 4>}, {pipeline_mode = #tpu.pipeline_mode<synchronous>, transform_indices = @transform_6, window_bounds = array<i64: 2, 4>}, {pipeline_mode = #tpu.pipeline_mode<synchronous>, transform_indices = @transform_7, window_bounds = array<i64: 2, 5>}, {pipeline_mode = #tpu.pipeline_mode<synchronous>, transform_indices = @transform_8, window_bounds = array<i64: 2, 5>}, {pipeline_mode = #tpu.pipeline_mode<synchronous>, transform_indices = @transform_9, window_bounds = array<i64: 2, 16>}, {pipeline_mode = #tpu.pipeline_mode<synchronous>, transform_indices = @transform_10, window_bounds = array<i64: 2, 16>}, {pipeline_mode = #tpu.pipeline_mode<synchronous>, transform_indices = @transform_11, window_bounds = array<i64: 2, 16>}, {pipeline_mode = #tpu.pipeline_mode<synchronous>, transform_indices = @transform_12, window_bounds = array<i64: 2, 16>}, {transform_indices = @transform_13, window_bounds = array<i64: 1, 8, 512>}, {transform_indices = @transform_14, window_bounds = array<i64: 8, 512>}, {transform_indices = @transform_15, window_bounds = array<i64: 1, 8, 128>}]} {
    %c0_i32 = arith.constant 0 : i32
    %0 = arith.cmpi eq, %arg1, %c0_i32 : i32
    %1 = arith.extui %0 : i1 to i32
    %c0_i32_0 = arith.constant 0 : i32
    %2 = arith.cmpi ne, %1, %c0_i32_0 : i32
    scf.if %2 {
      %cst = arith.constant 0.000000e+00 : f32
      %17 = vector.broadcast %cst : f32 to vector<8x512xf32>
      %c0 = arith.constant 0 : index
      %c0_8 = arith.constant 0 : index
      %18 = vector.load %arg18[%c0, %c0_8] : memref<8x512xf32, #tpu.memory_space<vmem>>, vector<8x512xf32>
      tpu.vector_store %arg18[%c0, %c0_8], %17 {strides = array<i32>} : memref<8x512xf32, #tpu.memory_space<vmem>>, vector<8x512xf32>,
      %cst_9 = arith.constant 0.000000e+00 : f32
      %19 = vector.broadcast %cst_9 : f32 to vector<2x512xf32>
      %c0_10 = arith.constant 0 : index
      %c0_11 = arith.constant 0 : index
      %20 = vector.load %arg19[%c0_10, %c0_11] : memref<2x512xf32, #tpu.memory_space<vmem>>, vector<2x512xf32>
      tpu.vector_store %arg19[%c0_10, %c0_11], %19 {strides = array<i32>} : memref<2x512xf32, #tpu.memory_space<vmem>>, vector<2x512xf32>,
      %cst_12 = arith.constant 0.000000e+00 : f32
      %21 = vector.broadcast %cst_12 : f32 to vector<8x512xf32>
      %c0_13 = arith.constant 0 : index
      %c0_14 = arith.constant 0 : index
      %22 = vector.load %arg20[%c0_13, %c0_14] : memref<8x512xf32, #tpu.memory_space<vmem>>, vector<8x512xf32>
      tpu.vector_store %arg20[%c0_13, %c0_14], %21 {strides = array<i32>} : memref<8x512xf32, #tpu.memory_space<vmem>>, vector<8x512xf32>,
    } else {
    }
    %c2_i32 = arith.constant 2 : i32
    %3 = arith.cmpi slt, %arg1, %c2_i32 : i32
    %4 = arith.extui %3 : i1 to i32
    %c0_i32_1 = arith.constant 0 : i32
    %5 = arith.cmpi ne, %4, %c0_i32_1 : i32
    scf.if %5 {
      %c0 = arith.constant 0 : index
      %c0_8 = arith.constant 0 : index
      %c0_9 = arith.constant 0 : index
      %17 = vector.load %arg4[%c0, %c0_8, %c0_9] : memref<1x8x512xf32, #tpu.memory_space<vmem>>, vector<1x8x512xf32>
      %c0_10 = arith.constant 0 : index
      %c0_11 = arith.constant 0 : index
      %c0_12 = arith.constant 0 : index
      %18 = vector.load %arg2[%c0_10, %c0_11, %c0_12] : memref<1x8x512xf32, #tpu.memory_space<vmem>>, vector<1x8x512xf32>
      %19 = arith.subf %18, %17 : vector<1x8x512xf32>
      %c0_13 = arith.constant 0 : index
      %c0_14 = arith.constant 0 : index
      %c0_15 = arith.constant 0 : index
      %20 = vector.load %arg3[%c0_13, %c0_14, %c0_15] : memref<1x8x512xf32, #tpu.memory_space<vmem>>, vector<1x8x512xf32>
      %21 = arith.subf %20, %17 : vector<1x8x512xf32>
      %c0_16 = arith.constant 0 : index
      %c0_17 = arith.constant 0 : index
      %22 = vector.load %arg18[%c0_16, %c0_17] : memref<8x512xf32, #tpu.memory_space<vmem>>, vector<8x512xf32>
      %23 = arith.mulf %19, %19 : vector<1x8x512xf32>
      %24 = arith.mulf %21, %21 : vector<1x8x512xf32>
      %25 = arith.addf %23, %24 : vector<1x8x512xf32>
      %cst = arith.constant dense<0.000000e+00> : vector<8x512xf32>
      %26 = vector.multi_reduction <add>, %25, %cst [0] : vector<1x8x512xf32> to vector<8x512xf32>
      %27 = arith.addf %22, %26 : vector<8x512xf32>
      %c0_18 = arith.constant 0 : index
      %c0_19 = arith.constant 0 : index
      %28 = vector.load %arg18[%c0_18, %c0_19] : memref<8x512xf32, #tpu.memory_space<vmem>>, vector<8x512xf32>
      tpu.vector_store %arg18[%c0_18, %c0_19], %27 {strides = array<i32>} : memref<8x512xf32, #tpu.memory_space<vmem>>, vector<8x512xf32>,
    } else {
    }
    %c2_i32_2 = arith.constant 2 : i32
    %6 = arith.cmpi slt, %arg1, %c2_i32_2 : i32
    %c0_i32_3 = arith.constant 0 : i32
    %7 = arith.cmpi eq, %arg0, %c0_i32_3 : i32
    %8 = arith.andi %6, %7 : i1
    %9 = arith.extui %8 : i1 to i32
    %c0_i32_4 = arith.constant 0 : i32
    %10 = arith.cmpi ne, %9, %c0_i32_4 : i32
    scf.if %10 {
      %c0 = arith.constant 0 : index
      %c0_8 = arith.constant 0 : index
      %17 = vector.load %arg5[%c0, %c0_8] : memref<2x512xf32, #tpu.memory_space<vmem>>, vector<2x512xf32>
      %c0_9 = arith.constant 0 : index
      %c0_10 = arith.constant 0 : index
      %18 = vector.load %arg6[%c0_9, %c0_10] : memref<2x512xf32, #tpu.memory_space<vmem>>, vector<2x512xf32>
      %c0_11 = arith.constant 0 : index
      %c0_12 = arith.constant 0 : index
      %19 = vector.load %arg19[%c0_11, %c0_12] : memref<2x512xf32, #tpu.memory_space<vmem>>, vector<2x512xf32>
      %cst = arith.constant 0.000000e+00 : f32
      %20 = vector.broadcast %cst : f32 to vector<2x512xf32>
      %21 = arith.maximumf %17, %20 : vector<2x512xf32>
      %22 = arith.mulf %17, %18 : vector<2x512xf32>
      %23 = arith.subf %21, %22 : vector<2x512xf32>
      %24 = math.absf %17 : vector<2x512xf32>
      %cst_13 = arith.constant 0.000000e+00 : f32
      %25 = vector.broadcast %cst_13 : f32 to vector<2x512xf32>
      %26 = arith.subf %25, %24 : vector<2x512xf32>
      %27 = math.exp %26 : vector<2x512xf32>
      %cst_14 = arith.constant 1.000000e+00 : f32
      %28 = vector.broadcast %cst_14 : f32 to vector<2x512xf32>
      %29 = arith.addf %28, %27 : vector<2x512xf32>
      %30 = math.log %29 : vector<2x512xf32>
      %31 = arith.addf %23, %30 : vector<2x512xf32>
      %32 = arith.addf %19, %31 : vector<2x512xf32>
      %c0_15 = arith.constant 0 : index
      %c0_16 = arith.constant 0 : index
      %33 = vector.load %arg19[%c0_15, %c0_16] : memref<2x512xf32, #tpu.memory_space<vmem>>, vector<2x512xf32>
      tpu.vector_store %arg19[%c0_15, %c0_16], %32 {strides = array<i32>} : memref<2x512xf32, #tpu.memory_space<vmem>>, vector<2x512xf32>,
    } else {
    }
    %c3_i32 = arith.constant 3 : i32
    %11 = arith.cmpi slt, %arg1, %c3_i32 : i32
    %12 = arith.extui %11 : i1 to i32
    %c0_i32_5 = arith.constant 0 : i32
    %13 = arith.cmpi ne, %12, %c0_i32_5 : i32
    scf.if %13 {
      %c0 = arith.constant 0 : index
      %c0_8 = arith.constant 0 : index
      %c0_9 = arith.constant 0 : index
      %17 = vector.load %arg15[%c0, %c0_8, %c0_9] : memref<1x8x512xf32, #tpu.memory_space<vmem>>, vector<1x8x512xf32>
      %c0_10 = arith.constant 0 : index
      %c0_11 = arith.constant 0 : index
      %18 = vector.load %arg20[%c0_10, %c0_11] : memref<8x512xf32, #tpu.memory_space<vmem>>, vector<8x512xf32>
      %cst = arith.constant dense<0.000000e+00> : vector<8x512xf32>
      %19 = vector.multi_reduction <add>, %17, %cst [0] : vector<1x8x512xf32> to vector<8x512xf32>
      %c0_12 = arith.constant 0 : index
      %c0_13 = arith.constant 0 : index
      %20 = vector.load %arg16[%c0_12, %c0_13] : memref<8x512xf32, #tpu.memory_space<vmem>>, vector<8x512xf32>
      %21 = arith.mulf %19, %20 : vector<8x512xf32>
      %22 = arith.addf %18, %21 : vector<8x512xf32>
      %c0_14 = arith.constant 0 : index
      %c0_15 = arith.constant 0 : index
      %23 = vector.load %arg20[%c0_14, %c0_15] : memref<8x512xf32, #tpu.memory_space<vmem>>, vector<8x512xf32>
      tpu.vector_store %arg20[%c0_14, %c0_15], %22 {strides = array<i32>} : memref<8x512xf32, #tpu.memory_space<vmem>>, vector<8x512xf32>,
    } else {
    }
    %c2_i32_6 = arith.constant 2 : i32
    %14 = arith.cmpi eq, %arg1, %c2_i32_6 : i32
    %15 = arith.extui %14 : i1 to i32
    %c0_i32_7 = arith.constant 0 : i32
    %16 = arith.cmpi ne, %15, %c0_i32_7 : i32
    scf.if %16 {
      %c0 = arith.constant 0 : index
      %c0_8 = arith.constant 0 : index
      %17 = vector.load %arg18[%c0, %c0_8] : memref<8x512xf32, #tpu.memory_space<vmem>>, vector<8x512xf32>
      %18 = vector.shape_cast %17 : vector<8x512xf32> to vector<1x8x512xf32>
      %cst = arith.constant dense<0.000000e+00> : vector<1xf32>
      %19 = vector.multi_reduction <add>, %18, %cst [1, 2] : vector<1x8x512xf32> to vector<1xf32>
      %20 = vector.shape_cast %19 : vector<1xf32> to vector<1x1x1xf32>
      %21 = vector.extract %20[0, 0, 0] : f32 from vector<1x1x1xf32>
      %c0_9 = arith.constant 0 : index
      %c0_10 = arith.constant 0 : index
      %22 = vector.load %arg19[%c0_9, %c0_10] : memref<2x512xf32, #tpu.memory_space<vmem>>, vector<2x512xf32>
      %23 = vector.shape_cast %22 : vector<2x512xf32> to vector<1x2x512xf32>
      %cst_11 = arith.constant dense<0.000000e+00> : vector<1xf32>
      %24 = vector.multi_reduction <add>, %23, %cst_11 [1, 2] : vector<1x2x512xf32> to vector<1xf32>
      %25 = vector.shape_cast %24 : vector<1xf32> to vector<1x1x1xf32>
      %26 = vector.extract %25[0, 0, 0] : f32 from vector<1x1x1xf32>
      %c0_12 = arith.constant 0 : index
      %c0_13 = arith.constant 0 : index
      %27 = vector.load %arg20[%c0_12, %c0_13] : memref<8x512xf32, #tpu.memory_space<vmem>>, vector<8x512xf32>
      %28 = vector.shape_cast %27 : vector<8x512xf32> to vector<1x8x512xf32>
      %cst_14 = arith.constant dense<0.000000e+00> : vector<1xf32>
      %29 = vector.multi_reduction <add>, %28, %cst_14 [1, 2] : vector<1x8x512xf32> to vector<1xf32>
      %30 = vector.shape_cast %29 : vector<1xf32> to vector<1x1x1xf32>
      %31 = vector.extract %30[0, 0, 0] : f32 from vector<1x1x1xf32>
      %c0_i32_15 = arith.constant 0 : i32
      %32 = arith.cmpi eq, %arg0, %c0_i32_15 : i32
      %33 = arith.extui %32 : i1 to i32
      %34 = arith.sitofp %33 : i32 to f32
      %c0_16 = arith.constant 0 : index
      %c0_17 = arith.constant 0 : index
      %35 = vector.load %arg7[%c0_16, %c0_17] : memref<2x4xf32, #tpu.memory_space<vmem>>, vector<2x4xf32>
      %c0_18 = arith.constant 0 : index
      %c0_19 = arith.constant 0 : index
      %36 = vector.load %arg8[%c0_18, %c0_19] : memref<2x4xf32, #tpu.memory_space<vmem>>, vector<2x4xf32>
      %37 = tpu.iota {dimensions = array<i32: 1>} : vector<2x4xi32>
      %cst_20 = arith.constant dense<0xFF800000> : vector<2xf32>
      %38 = vector.multi_reduction <maximumf>, %36, %cst_20 [1] : vector<2x4xf32> to vector<2xf32>
      %39 = vector.shape_cast %38 : vector<2xf32> to vector<2x1xf32>
      %40 = vector.broadcast %39 : vector<2x1xf32> to vector<2x4xf32>
      %41 = arith.cmpf oeq, %36, %40 : vector<2x4xf32>
      %c2147483647_i32 = arith.constant 2147483647 : i32
      %42 = vector.broadcast %c2147483647_i32 : i32 to vector<2x4xi32>
      %43 = arith.select %41, %37, %42 : vector<2x4xi1>, vector<2x4xi32>
      %cst_21 = arith.constant dense<2147483647> : vector<2xi32>
      %44 = vector.multi_reduction <minsi>, %43, %cst_21 [1] : vector<2x4xi32> to vector<2xi32>
      %45 = vector.shape_cast %44 : vector<2xi32> to vector<2x1xi32>
      %46 = vector.broadcast %45 : vector<2x1xi32> to vector<2x4xi32>
      %47 = arith.cmpi eq, %37, %46 : vector<2x4xi32>
      %48 = arith.extui %47 : vector<2x4xi1> to vector<2x4xi32>
      %49 = arith.sitofp %48 : vector<2x4xi32> to vector<2x4xf32>
      %cst_22 = arith.constant dense<0xFF800000> : vector<2xf32>
      %50 = vector.multi_reduction <maximumf>, %35, %cst_22 [1] : vector<2x4xf32> to vector<2xf32>
      %51 = vector.shape_cast %50 : vector<2xf32> to vector<2x1xf32>
      %52 = vector.broadcast %51 : vector<2x1xf32> to vector<2x4xf32>
      %53 = arith.subf %35, %52 : vector<2x4xf32>
      %54 = math.exp %53 : vector<2x4xf32>
      %cst_23 = arith.constant dense<0.000000e+00> : vector<2xf32>
      %55 = vector.multi_reduction <add>, %54, %cst_23 [1] : vector<2x4xf32> to vector<2xf32>
      %56 = vector.shape_cast %55 : vector<2xf32> to vector<2x1xf32>
      %57 = math.log %56 : vector<2x1xf32>
      %58 = arith.addf %51, %57 : vector<2x1xf32>
      %59 = arith.mulf %49, %35 : vector<2x4xf32>
      %cst_24 = arith.constant dense<0.000000e+00> : vector<2xf32>
      %60 = vector.multi_reduction <add>, %59, %cst_24 [1] : vector<2x4xf32> to vector<2xf32>
      %61 = vector.shape_cast %60 : vector<2xf32> to vector<2x1xf32>
      %62 = arith.subf %58, %61 : vector<2x1xf32>
      %63 = vector.shape_cast %62 : vector<2x1xf32> to vector<1x2x1xf32>
      %cst_25 = arith.constant dense<0.000000e+00> : vector<1xf32>
      %64 = vector.multi_reduction <add>, %63, %cst_25 [1, 2] : vector<1x2x1xf32> to vector<1xf32>
      %65 = vector.shape_cast %64 : vector<1xf32> to vector<1x1x1xf32>
      %66 = vector.extract %65[0, 0, 0] : f32 from vector<1x1x1xf32>
      %67 = arith.mulf %34, %66 : f32
      %c0_26 = arith.constant 0 : index
      %c0_27 = arith.constant 0 : index
      %68 = vector.load %arg9[%c0_26, %c0_27] : memref<2x5xf32, #tpu.memory_space<vmem>>, vector<2x5xf32>
      %c0_28 = arith.constant 0 : index
      %c0_29 = arith.constant 0 : index
      %69 = vector.load %arg10[%c0_28, %c0_29] : memref<2x5xf32, #tpu.memory_space<vmem>>, vector<2x5xf32>
      %70 = tpu.iota {dimensions = array<i32: 1>} : vector<2x5xi32>
      %cst_30 = arith.constant dense<0xFF800000> : vector<2xf32>
      %71 = vector.multi_reduction <maximumf>, %69, %cst_30 [1] : vector<2x5xf32> to vector<2xf32>
      %72 = vector.shape_cast %71 : vector<2xf32> to vector<2x1xf32>
      %73 = vector.broadcast %72 : vector<2x1xf32> to vector<2x5xf32>
      %74 = arith.cmpf oeq, %69, %73 : vector<2x5xf32>
      %c2147483647_i32_31 = arith.constant 2147483647 : i32
      %75 = vector.broadcast %c2147483647_i32_31 : i32 to vector<2x5xi32>
      %76 = arith.select %74, %70, %75 : vector<2x5xi1>, vector<2x5xi32>
      %cst_32 = arith.constant dense<2147483647> : vector<2xi32>
      %77 = vector.multi_reduction <minsi>, %76, %cst_32 [1] : vector<2x5xi32> to vector<2xi32>
      %78 = vector.shape_cast %77 : vector<2xi32> to vector<2x1xi32>
      %79 = vector.broadcast %78 : vector<2x1xi32> to vector<2x5xi32>
      %80 = arith.cmpi eq, %70, %79 : vector<2x5xi32>
      %81 = arith.extui %80 : vector<2x5xi1> to vector<2x5xi32>
      %82 = arith.sitofp %81 : vector<2x5xi32> to vector<2x5xf32>
      %cst_33 = arith.constant dense<0xFF800000> : vector<2xf32>
      %83 = vector.multi_reduction <maximumf>, %68, %cst_33 [1] : vector<2x5xf32> to vector<2xf32>
      %84 = vector.shape_cast %83 : vector<2xf32> to vector<2x1xf32>
      %85 = vector.broadcast %84 : vector<2x1xf32> to vector<2x5xf32>
      %86 = arith.subf %68, %85 : vector<2x5xf32>
      %87 = math.exp %86 : vector<2x5xf32>
      %cst_34 = arith.constant dense<0.000000e+00> : vector<2xf32>
      %88 = vector.multi_reduction <add>, %87, %cst_34 [1] : vector<2x5xf32> to vector<2xf32>
      %89 = vector.shape_cast %88 : vector<2xf32> to vector<2x1xf32>
      %90 = math.log %89 : vector<2x1xf32>
      %91 = arith.addf %84, %90 : vector<2x1xf32>
      %92 = arith.mulf %82, %68 : vector<2x5xf32>
      %cst_35 = arith.constant dense<0.000000e+00> : vector<2xf32>
      %93 = vector.multi_reduction <add>, %92, %cst_35 [1] : vector<2x5xf32> to vector<2xf32>
      %94 = vector.shape_cast %93 : vector<2xf32> to vector<2x1xf32>
      %95 = arith.subf %91, %94 : vector<2x1xf32>
      %96 = vector.shape_cast %95 : vector<2x1xf32> to vector<1x2x1xf32>
      %cst_36 = arith.constant dense<0.000000e+00> : vector<1xf32>
      %97 = vector.multi_reduction <add>, %96, %cst_36 [1, 2] : vector<1x2x1xf32> to vector<1xf32>
      %98 = vector.shape_cast %97 : vector<1xf32> to vector<1x1x1xf32>
      %99 = vector.extract %98[0, 0, 0] : f32 from vector<1x1x1xf32>
      %100 = arith.mulf %34, %99 : f32
      %c0_37 = arith.constant 0 : index
      %c0_38 = arith.constant 0 : index
      %101 = vector.load %arg11[%c0_37, %c0_38] : memref<2x16xf32, #tpu.memory_space<vmem>>, vector<2x16xf32>
      %c0_39 = arith.constant 0 : index
      %c0_40 = arith.constant 0 : index
      %102 = vector.load %arg12[%c0_39, %c0_40] : memref<2x16xf32, #tpu.memory_space<vmem>>, vector<2x16xf32>
      %c0_41 = arith.constant 0 : index
      %c0_42 = arith.constant 0 : index
      %103 = vector.load %arg13[%c0_41, %c0_42] : memref<2x16xf32, #tpu.memory_space<vmem>>, vector<2x16xf32>
      %c0_43 = arith.constant 0 : index
      %c0_44 = arith.constant 0 : index
      %104 = vector.load %arg14[%c0_43, %c0_44] : memref<2x16xf32, #tpu.memory_space<vmem>>, vector<2x16xf32>
      %cst_45 = arith.constant 1.000000e+00 : f32
      %105 = vector.broadcast %cst_45 : f32 to vector<2x16xf32>
      %106 = arith.addf %105, %102 : vector<2x16xf32>
      %107 = arith.mulf %101, %101 : vector<2x16xf32>
      %108 = arith.subf %106, %107 : vector<2x16xf32>
      %109 = math.exp %102 : vector<2x16xf32>
      %110 = arith.subf %108, %109 : vector<2x16xf32>
      %111 = vector.shape_cast %110 : vector<2x16xf32> to vector<1x2x16xf32>
      %cst_46 = arith.constant dense<0.000000e+00> : vector<1xf32>
      %112 = vector.multi_reduction <add>, %111, %cst_46 [1, 2] : vector<1x2x16xf32> to vector<1xf32>
      %113 = vector.shape_cast %112 : vector<1xf32> to vector<1x1x1xf32>
      %114 = vector.extract %113[0, 0, 0] : f32 from vector<1x1x1xf32>
      %cst_47 = arith.constant -5.000000e-01 : f32
      %115 = arith.mulf %cst_47, %114 : f32
      %116 = arith.mulf %34, %115 : f32
      %cst_48 = arith.constant 1.000000e+00 : f32
      %117 = vector.broadcast %cst_48 : f32 to vector<2x16xf32>
      %118 = arith.addf %117, %104 : vector<2x16xf32>
      %119 = arith.mulf %103, %103 : vector<2x16xf32>
      %120 = arith.subf %118, %119 : vector<2x16xf32>
      %121 = math.exp %104 : vector<2x16xf32>
      %122 = arith.subf %120, %121 : vector<2x16xf32>
      %123 = vector.shape_cast %122 : vector<2x16xf32> to vector<1x2x16xf32>
      %cst_49 = arith.constant dense<0.000000e+00> : vector<1xf32>
      %124 = vector.multi_reduction <add>, %123, %cst_49 [1, 2] : vector<1x2x16xf32> to vector<1xf32>
      %125 = vector.shape_cast %124 : vector<1xf32> to vector<1x1x1xf32>
      %126 = vector.extract %125[0, 0, 0] : f32 from vector<1x1x1xf32>
      %cst_50 = arith.constant -5.000000e-01 : f32
      %127 = arith.mulf %cst_50, %126 : f32
      %128 = arith.mulf %34, %127 : f32
      %129 = tpu.iota {dimensions = array<i32: 0>} : vector<8x128xi32>
      %cst_51 = arith.constant 0.000000e+00 : f32
      %130 = vector.broadcast %cst_51 : f32 to vector<8x128xf32>
      %c0_i32_52 = arith.constant 0 : i32
      %131 = vector.broadcast %c0_i32_52 : i32 to vector<8x128xi32>
      %132 = arith.cmpi eq, %129, %131 : vector<8x128xi32>
      %133 = vector.broadcast %21 : f32 to vector<8x128xf32>
      %134 = arith.select %132, %133, %130 : vector<8x128xi1>, vector<8x128xf32>
      %c1_i32 = arith.constant 1 : i32
      %135 = vector.broadcast %c1_i32 : i32 to vector<8x128xi32>
      %136 = arith.cmpi eq, %129, %135 : vector<8x128xi32>
      %137 = vector.broadcast %26 : f32 to vector<8x128xf32>
      %138 = arith.select %136, %137, %134 : vector<8x128xi1>, vector<8x128xf32>
      %c2_i32_53 = arith.constant 2 : i32
      %139 = vector.broadcast %c2_i32_53 : i32 to vector<8x128xi32>
      %140 = arith.cmpi eq, %129, %139 : vector<8x128xi32>
      %141 = vector.broadcast %67 : f32 to vector<8x128xf32>
      %142 = arith.select %140, %141, %138 : vector<8x128xi1>, vector<8x128xf32>
      %c3_i32_54 = arith.constant 3 : i32
      %143 = vector.broadcast %c3_i32_54 : i32 to vector<8x128xi32>
      %144 = arith.cmpi eq, %129, %143 : vector<8x128xi32>
      %145 = vector.broadcast %100 : f32 to vector<8x128xf32>
      %146 = arith.select %144, %145, %142 : vector<8x128xi1>, vector<8x128xf32>
      %c4_i32 = arith.constant 4 : i32
      %147 = vector.broadcast %c4_i32 : i32 to vector<8x128xi32>
      %148 = arith.cmpi eq, %129, %147 : vector<8x128xi32>
      %149 = vector.broadcast %116 : f32 to vector<8x128xf32>
      %150 = arith.select %148, %149, %146 : vector<8x128xi1>, vector<8x128xf32>
      %c5_i32 = arith.constant 5 : i32
      %151 = vector.broadcast %c5_i32 : i32 to vector<8x128xi32>
      %152 = arith.cmpi eq, %129, %151 : vector<8x128xi32>
      %153 = vector.broadcast %128 : f32 to vector<8x128xf32>
      %154 = arith.select %152, %153, %150 : vector<8x128xi1>, vector<8x128xf32>
      %c6_i32 = arith.constant 6 : i32
      %155 = vector.broadcast %c6_i32 : i32 to vector<8x128xi32>
      %156 = arith.cmpi eq, %129, %155 : vector<8x128xi32>
      %157 = vector.broadcast %31 : f32 to vector<8x128xf32>
      %158 = arith.select %156, %157, %154 : vector<8x128xi1>, vector<8x128xf32>
      %c0_55 = arith.constant 0 : index
      %c0_56 = arith.constant 0 : index
      %c0_57 = arith.constant 0 : index
      %159 = vector.load %arg17[%c0_55, %c0_56, %c0_57] : memref<1x8x128xf32, #tpu.memory_space<vmem>>, vector<1x8x128xf32>
      %160 = vector.shape_cast %159 : vector<1x8x128xf32> to vector<8x128xf32>
      %161 = vector.shape_cast %158 : vector<8x128xf32> to vector<1x8x128xf32>
      tpu.vector_store %arg17[%c0_55, %c0_56, %c0_57], %161 {strides = array<i32>} : memref<1x8x128xf32, #tpu.memory_space<vmem>>, vector<1x8x128xf32>,
    } else {
    }
    return
  }
  func.func @transform_0(%arg0: i32, %arg1: i32) -> (i32, i32, i32) {
    %c1_i32 = arith.constant 1 : i32
    %0 = arith.minsi %arg1, %c1_i32 : i32
    %c0_i32 = arith.constant 0 : i32
    %c0_i32_0 = arith.constant 0 : i32
    return %arg0, %c0_i32, %0 : i32, i32, i32
  }
  func.func @transform_1(%arg0: i32, %arg1: i32) -> (i32, i32, i32) {
    %c1_i32 = arith.constant 1 : i32
    %0 = arith.minsi %arg1, %c1_i32 : i32
    %c0_i32 = arith.constant 0 : i32
    %c0_i32_0 = arith.constant 0 : i32
    return %arg0, %c0_i32, %0 : i32, i32, i32
  }
  func.func @transform_2(%arg0: i32, %arg1: i32) -> (i32, i32, i32) {
    %c1_i32 = arith.constant 1 : i32
    %0 = arith.minsi %arg1, %c1_i32 : i32
    %c0_i32 = arith.constant 0 : i32
    %c0_i32_0 = arith.constant 0 : i32
    return %arg0, %c0_i32, %0 : i32, i32, i32
  }
  func.func @transform_3(%arg0: i32, %arg1: i32) -> (i32, i32) {
    %c1_i32 = arith.constant 1 : i32
    %0 = arith.minsi %arg1, %c1_i32 : i32
    %c0_i32 = arith.constant 0 : i32
    %c0_i32_0 = arith.constant 0 : i32
    return %c0_i32, %0 : i32, i32
  }
  func.func @transform_4(%arg0: i32, %arg1: i32) -> (i32, i32) {
    %c1_i32 = arith.constant 1 : i32
    %0 = arith.minsi %arg1, %c1_i32 : i32
    %c0_i32 = arith.constant 0 : i32
    %c0_i32_0 = arith.constant 0 : i32
    return %c0_i32, %0 : i32, i32
  }
  func.func @transform_5(%arg0: i32, %arg1: i32) -> (i32, i32) {
    %c0_i32 = arith.constant 0 : i32
    %c0_i32_0 = arith.constant 0 : i32
    %c0_i32_1 = arith.constant 0 : i32
    return %c0_i32, %c0_i32_0 : i32, i32
  }
  func.func @transform_6(%arg0: i32, %arg1: i32) -> (i32, i32) {
    %c0_i32 = arith.constant 0 : i32
    %c0_i32_0 = arith.constant 0 : i32
    %c0_i32_1 = arith.constant 0 : i32
    return %c0_i32, %c0_i32_0 : i32, i32
  }
  func.func @transform_7(%arg0: i32, %arg1: i32) -> (i32, i32) {
    %c0_i32 = arith.constant 0 : i32
    %c0_i32_0 = arith.constant 0 : i32
    %c0_i32_1 = arith.constant 0 : i32
    return %c0_i32, %c0_i32_0 : i32, i32
  }
  func.func @transform_8(%arg0: i32, %arg1: i32) -> (i32, i32) {
    %c0_i32 = arith.constant 0 : i32
    %c0_i32_0 = arith.constant 0 : i32
    %c0_i32_1 = arith.constant 0 : i32
    return %c0_i32, %c0_i32_0 : i32, i32
  }
  func.func @transform_9(%arg0: i32, %arg1: i32) -> (i32, i32) {
    %c0_i32 = arith.constant 0 : i32
    %c0_i32_0 = arith.constant 0 : i32
    %c0_i32_1 = arith.constant 0 : i32
    return %c0_i32, %c0_i32_0 : i32, i32
  }
  func.func @transform_10(%arg0: i32, %arg1: i32) -> (i32, i32) {
    %c0_i32 = arith.constant 0 : i32
    %c0_i32_0 = arith.constant 0 : i32
    %c0_i32_1 = arith.constant 0 : i32
    return %c0_i32, %c0_i32_0 : i32, i32
  }
  func.func @transform_11(%arg0: i32, %arg1: i32) -> (i32, i32) {
    %c0_i32 = arith.constant 0 : i32
    %c0_i32_0 = arith.constant 0 : i32
    %c0_i32_1 = arith.constant 0 : i32
    return %c0_i32, %c0_i32_0 : i32, i32
  }
  func.func @transform_12(%arg0: i32, %arg1: i32) -> (i32, i32) {
    %c0_i32 = arith.constant 0 : i32
    %c0_i32_0 = arith.constant 0 : i32
    %c0_i32_1 = arith.constant 0 : i32
    return %c0_i32, %c0_i32_0 : i32, i32
  }
  func.func @transform_13(%arg0: i32, %arg1: i32) -> (i32, i32, i32) {
    %c2_i32 = arith.constant 2 : i32
    %0 = arith.minsi %arg1, %c2_i32 : i32
    %c0_i32 = arith.constant 0 : i32
    %c0_i32_0 = arith.constant 0 : i32
    return %arg0, %c0_i32, %0 : i32, i32, i32
  }
  func.func @transform_14(%arg0: i32, %arg1: i32) -> (i32, i32) {
    %c2_i32 = arith.constant 2 : i32
    %0 = arith.minsi %arg1, %c2_i32 : i32
    %c0_i32 = arith.constant 0 : i32
    %c0_i32_0 = arith.constant 0 : i32
    return %c0_i32, %0 : i32, i32
  }
  func.func @transform_15(%arg0: i32, %arg1: i32) -> (i32, i32, i32) {
    %c0_i32 = arith.constant 0 : i32
    %c0_i32_0 = arith.constant 0 : i32
    %c0_i32_1 = arith.constant 0 : i32
    return %arg0, %c0_i32, %c0_i32_0 : i32, i32, i32
  }
}

</mosaic_0001>

<bundles_post_ra>
// kernel: tpu_custom_call.1
= control target key start
LH: loop header
LB: loop body
LE: loop exit
PB: predicated region body
PF: predicated region fallthrough
CT: control target
= control target key end

     0   :  { %s3004_s0 = inlined_call_operand.hbm [shape: f32[2,8,1024], index: 0, kind: input, shape index: {}]   ;;  %s3005_s1 = inlined_call_operand.hbm [shape: f32[2,8,1024], index: 1, kind: input, shape index: {}]   ;;  %s3006_s2 = inlined_call_operand.hbm [shape: f32[2,8,1024], index: 2, kind: input, shape index: {}]   ;;  %s3007_s3 = inlined_call_operand.hbm [shape: f32[2,1024], index: 3, kind: input, shape index: {}]   ;;  %s3008_s4 = inlined_call_operand.hbm [shape: f32[2,1024], index: 4, kind: input, shape index: {}]   ;;  %s3009_s5 = inlined_call_operand.vmem [shape: f32[2,4], index: 5, kind: input, shape index: {}]   ;;  %s3010_s6 = inlined_call_operand.vmem [shape: f32[2,4], index: 6, kind: input, shape index: {}]   ;;  %s3011_s7 = inlined_call_operand.vmem [shape: f32[2,5], index: 7, kind: input, shape index: {}]   ;;  %s3012_s8 = inlined_call_operand.vmem [shape: f32[2,5], index: 8, kind: input, shape index: {}]   ;;  %s3013_s9 = inlined_call_operand.vmem [shape: f32[2,16], index: 9, kind: input, shape index: {}]   ;;  %s3014_s10 = inlined_call_operand.vmem [shape: f32[2,16], index: 10, kind: input, shape index: {}]   ;;  %s3015_s11 = inlined_call_operand.vmem [shape: f32[2,16], index: 11, kind: input, shape index: {}]   ;;  %s3016_s12 = inlined_call_operand.vmem [shape: f32[2,16], index: 12, kind: input, shape index: {}]   ;;  %s3017_s13 = inlined_call_operand.hbm [shape: f32[2,8,1536], index: 13, kind: input, shape index: {}]   ;;  %s3018_s14 = inlined_call_operand.hbm [shape: f32[8,1536], index: 14, kind: input, shape index: {}]   ;;  %s3019_s15 = inlined_call_operand.hbm [shape: f32[2,8,128], index: 15, kind: output, shape index: {}]  }
   0x1   :  { %3066 = sst [smem:[#allocation48_spill]] %s3004_s0 }
   0x2   :  { %3067 = sst [smem:[#allocation49_spill]] %s3005_s1 }
   0x3   :  { %3068 = sst [smem:[#allocation50_spill]] %s3006_s2 }
   0x4   :  { %3069 = sst [smem:[#allocation51_spill]] %s3007_s3 }
   0x5   :  { %3070 = sst [smem:[#allocation52_spill]] %s3009_s5 }
   0x6   :  { %3071 = sst [smem:[#allocation53_spill]] %s3010_s6 }
   0x7   :  { %3072 = sst [smem:[#allocation54_spill]] %s3011_s7 }
   0x8   :  { %3073 = sst [smem:[#allocation55_spill]] %s3012_s8 }
   0x9   :  { %3074 = sst [smem:[#allocation56_spill]] %s3013_s9 }
   0xa   :  { %3075 = sst [smem:[#allocation57_spill]] %s3014_s10 }
   0xb   :  { %3076 = sst [smem:[#allocation58_spill]] %s3015_s11 }
   0xc   :  { %3077 = sst [smem:[#allocation59_spill]] %s3016_s12 }
   0xd   :  { %3078 = sst [smem:[#allocation60_spill]] %s3017_s13 }
   0xe   :  { %3079 = sst [smem:[#allocation61_spill]] %s3018_s14 }
   0xf   :  { %3080 = sst [smem:[#allocation62_spill]] %s3019_s15 }
  0x10   :  { %20 = vsyncpa [#allocation6], 0 }
  0x11   :  { %22 = vsyncpa [#allocation6 + $0x1], 0 }
  0x12   :  { %23 = vsyncpa [#allocation9], 0 }
  0x13   :  { %25 = vsyncpa [#allocation9 + $0x1], 0 }
  0x14   :  { %26 = vsyncpa [#allocation12], 0 }
  0x15   :  { %28 = vsyncpa [#allocation12 + $0x1], 0 }
  0x16   :  { %29 = vsyncpa [#allocation15], 0 }
  0x17   :  { %31 = vsyncpa [#allocation15 + $0x1], 0 }
  0x18   :  { %32 = vsyncpa [#allocation7], 0 }
  0x19   :  { %34 = vsyncpa [#allocation7 + $0x1], 0  ;;  %s2231_s18 = smov 0   ;;  %s2233_s19 = smov 0  }
  0x1a   :  { %s2235_s20 = smov 0   ;;  %s2237_s21 = smov 0  }
  0x1b   :  { %s2239_s22 = smov 0   ;;  %s2241_s23 = smov 0  }
  0x1c   :  { %s2243_s24 = smov 0   ;;  %s2245_s25 = smov 0  }
  0x1d   :  { %s2247_s26 = smov 0   ;;  %s2249_s27 = smov 0  }
  0x1e   :  { %s2251_s28 = smov 0   ;;  %s2253_s29 = smov 0  }
  0x1f   :  { %s2255_s30 = smov 0   ;;  %s2257_s16 = smov 0  }
  0x20   :  { %s2259_s17 = smov 0   ;;  %s2261_s15 = smov 0  }
  0x21   :  { %s2263_s11 = smov 0   ;;  %s2265_s9 = smov 0  }
  0x22   :  { %s2267_s12 = smov 0   ;;  %s2269_s10 = smov 0  }
  0x23 LB: > { %3081 = sst [smem:[#allocation24_spill]] %s2062_s18  ;;  %s2332_s7 = sadd.s32 4294967295, %s2138_s10   ;;  %s2138_s10 = sphi %s2269_s10, %s40_s10   ;;  %s2134_s12 = sphi %s2267_s12, %s3204_s12   ;;  %s2130_s9 = sphi %s2265_s9, %s3211_s9   ;;  %s2126_s11 = sphi %s2263_s11, %s3202_s11   ;;  %s2122_s15 = sphi %s2261_s15, %s3210_s15   ;;  %s2118_s17 = sphi %s2259_s17, %s3201_s17   ;;  %s2114_s16 = sphi %s2257_s16, %s3200_s16   ;;  %s2110_s30 = sphi %s2255_s30, %s3199_s30   ;;  %s2106_s29 = sphi %s2253_s29, %s3209_s29   ;;  %s2102_s28 = sphi %s2251_s28, %s3197_s28   ;;  %s2098_s27 = sphi %s2249_s27, %s3196_s27   ;;  %s2094_s26 = sphi %s2247_s26, %s3208_s26   ;;  %s2090_s25 = sphi %s2245_s25, %s3207_s25   ;;  %s2086_s24 = sphi %s2243_s24, %s3206_s24   ;;  %s2082_s23 = sphi %s2241_s23, %s3205_s23   ;;  %s2078_s22 = sphi %s2239_s22, %s3195_s22   ;;  %s2074_s21 = sphi %s2237_s21, %s3194_s21   ;;  %s2070_s20 = sphi %s2235_s20, %s3193_s20   ;;  %s2066_s19 = sphi %s2233_s19, %s3192_s19   ;;  %s2062_s18 = sphi %s2231_s18, %s3191_s18  }
  0x24   : > { %3082 = sst [smem:[#allocation25_spill]] %s2066_s19  ;;  %s49_s8 = sadd.s32 1, %s2130_s9 }
  0x25   : > { %3083 = sst [smem:[#allocation26_spill]] %s2070_s20  ;;  %s52_s6 = sadd.s32 1, %s2134_s12 }
  0x26   : > { %3084 = sst [smem:[#allocation27_spill]] %s2074_s21  ;;  %p50_p0 = scmp.ge.s32.totalorder %s49_s8, 3 }
  0x27   : > { %3085 = sst [smem:[#allocation28_spill]] %s2078_s22  ;;  %p56_p1 = scmp.lt.s32.totalorder %s2130_s9, 1 }
  0x28   : > { %3086 = sst [smem:[#allocation29_spill]] %s2082_s23  ;;  %p72_p2 = scmp.ne.s32.totalorder %s2118_s17, %s2114_s16 }
  0x29   : > { %3087 = sst [smem:[#allocation30_spill]] %s2102_s28  ;;  %s3213_s8 = smov (%p50_p0, %s49_s8), 0 }
  0x2a   : > { %3088 = sst [smem:[#allocation31_spill]] %s2106_s29  ;;  %s3215_s6 = smov (!%p50_p0, %s52_s6), %s2134_s12 }
  0x2b   : > { %3089 = sst [smem:[#allocation32_spill]] %s2114_s16  ;;  %p54_p3 = scmp.ge.s32.totalorder %s3215_s6, 2 }
  0x2c   : > { %3090 = sst [smem:[#allocation33_spill]] %s2118_s17  ;;  %p58_p4 = scmp.lt.s32.totalorder %s3213_s8, 1 }
  0x2d   : > { %3091 = sst [smem:[#allocation34_spill]] %s2122_s15  ;;  %p3045_p5 = scmp.eq.s32.totalorder %s2138_s10, 0 }
  0x2e   : > { %3092 = sst [smem:[#allocation35_spill]] %s2126_s11  ;;  %s65_s11 = sadd.s32 1, %s2118_s17 }
  0x2f   : > { %3093 = sst [smem:[#allocation36_spill]] %s2134_s12  ;;  %p78_p6 = scmp.ne.s32.totalorder %s2114_s16, %s2110_s30 }
  0x30   : > { %3094 = sst [smem:[#allocation37_spill]] %s3213_s8  ;;  %s3217_s6 = smov (%p54_p3, %s3215_s6), 0 }
  0x31   : > { %s2345_s15 = scalar_select %p56_p1, %s2130_s9, 1 }
  0x32   : > { %3095 = sst [smem:[#allocation38_spill]] %s3217_s6  ;;  %s2356_s14 = ssub.s32 %s2134_s12, %s3217_s6 }
  0x33   : > { %s59_s5 = scalar_select %p58_p4, %s3213_s8, 1 }
  0x34   : > { %p2360_p7 = por %p3045_p5, %p72_p2  ;;  %p3044_p8 = scmp.eq.s32.totalorder %s2332_s7, 0 }
  0x35   : > { %s2365_s22 = ssub.s32 %s2345_s15, %s59_s5  ;;  %p443_p12 = scmp.eq.s32.totalorder %s2356_s14, 0 }
  0x36   : > { %s62_s30 = sor.u32 %s2365_s22, %s2356_s14  ;;  %p2373_p11 = por %p3044_p8, %p78_p6 }
  0x37   : > { %p63_p10 = scmp.eq.s32.totalorder %s62_s30, 0  ;;  %s445_s5 = sadd.s32 1, %s2070_s20 }
  0x38   : > { %s3097_s6 = scalar_select %p2373_p11, 1, 0 }
  0x39   : > { %s2380_s16 = scalar_select %p63_p10, %s2118_s17, %s65_s11  }
  0x3a   : > { %3098 = sst [smem:[#allocation39_spill]] %s3097_s6  ;;  %p455_p13 = scmp.ne.s32.totalorder %s2070_s20, %s2066_s19 }
  0x3b   : > { %3099 = sst [smem:[#allocation40_spill]] %s2380_s16  ;;  %p456_p0 = scmp.eq.s32.totalorder %s2332_s7, 5 }
  0x3c   : > { %s2383_s23 = scalar_select %p443_p12, %s2070_s20, %s445_s5  }
  0x3d   : > { %p461_p1 = scmp.ne.s32.totalorder %s2066_s19, %s2062_s18  ;;  %s3101_s2 = sadd.s32 4294967294, %s2138_s10  }
  0x3e   : > { %3100 = sst [smem:[#allocation41_spill]] %s2383_s23  ;;  %p462_p2 = scmp.eq.s32.totalorder %s3101_s2, 5 }
  0x3f   : > { %p2392_p3 = por %p456_p0, %p455_p13  ;;  %p3043_p6 = scmp.lt.s32.totalorder %s2138_s10, 6 }
  0x40   : > { %p2396_p4 = por %p462_p2, %p461_p1  ;;  %s3038_s11 = sand.u32 1, %s2118_s17  }
  0x41   : > { %s3102_s30 = scalar_select %p2392_p3, 1, 0 }
  0x42   : > { %s3104_s6 = scalar_select %p2396_p4, 1, 0 }
  0x43   : > { %3103 = sst [smem:[#allocation42_spill]] %s3102_s30  ;;  %s1434_s16 = sshll.u32 %s2345_s15, 2 }
  0x44   : > { %3105 = sst [smem:[#allocation43_spill]] %s3104_s6  ;;  %s2405_s5 = sshll.u32 %s3038_s11, 5 }
  0x45   : > { %3106 = sst [smem:[#allocation44_spill]] %s2405_s5  ;;  %s1435_s23 = sshll.u32 %s2134_s12, 3 }
  0x46   : > { %s518_s20 = sadd.s32 %s1435_s23, %s1434_s16  ;;  %p2412_p10 = pnand %p3043_p6, %p2360_p7 }
  0x47   : > { %s2416_s18 = sshll.u32 %s518_s20, 7  ;;  %s2419_s6 = sand.u32 1, %s2138_s10  }
  0x48   : > { %s3107_s2 = scalar_select %p2412_p10, 1, 0 }
  0x49   : > { %s3108_s1 = sld [smem:[#allocation49_spill]]  ;;  %s533_s21 = scalar_lea.vmem [#allocation8], %s2405_s5 }
  0x4a   : > { %s545_s23 = sshll.u32 %s533_s21, 4  ;;  %p2437_p0 = pneg %p2412_p10  ;;  %s2429_s23 = int_to_ptr.vmem [resolvable:$true] %s545_s23 }
  0x4f   : > { %s2425_s11 = scalar_lea.hbm %s3108_s1, %s2416_s18  ;;  %s1723_s21 = scalar_lea.hbm %s3108_s1, 2048 }
  0x50   : > { %s1718_s16 = scalar_lea.hbm %s2425_s11, 512  ;;  %p1724_p6 = scmp.lt.u32.totalorder %s2425_s11, %s3108_s1 }
  0x51   : > { %p1719_p13 = scmp.ne.s32.totalorder %s2425_s11, %s1718_s16  ;;  %p1725_p8 = scmp.lt.u32.totalorder %s1723_s21, %s1718_s16 }
  0x52   : > { %p1727_p9 = scmp.lt.u32.totalorder %s1718_s16, %s2425_s11 }
  0x53   : > { %p1721_p1 = pnand %p2437_p0, %p1719_p13  ;;  %p1726_p5 = por %p1725_p8, %p1724_p6 }
  0x55   : > { %p1722_p2 = pneg %p1721_p1  ;;  %p1728_p7 = por %p1727_p9, %p1726_p5 }
  0x57   : > { %p1729_p12 = pnand %p1728_p7, %p1722_p2 }
  0x59   : > { %1732 = shalt.err (!%p1729_p12)
}
  0x5a   : > { %s1733_s20 = scalar_lea.vmem %s2429_s23, 512  ;;  %s2140_s19 = smov [#allocation8]  }
  0x5b   : > { %p1734_p13 = scmp.ne.s32.totalorder %s2429_s23, %s1733_s20  ;;  %s1738_s30 = sshll.u32 %s2140_s19, 4  ;;  %s1739_s30 = int_to_ptr.vmem [resolvable:$false] %s1738_s30 }
  0x5c   : > { %s1740_s17 = scalar_lea.vmem %s1739_s30, 1024  ;;  %p1741_p3 = scmp.lt.s32.totalorder %s2429_s23, %s1739_s30 }
  0x5d   : > { %p1736_p1 = pnand %p1734_p13, %p2437_p0  ;;  %p1742_p11 = scmp.lt.s32.totalorder %s1740_s17, %s1733_s20 }
  0x5f   : > { %p1737_p4 = pneg %p1736_p1  ;;  %p1743_p8 = por %p1742_p11, %p1741_p3 }
  0x61   : > { %p1744_p6 = pnand %p1743_p8, %p1737_p4 }
  0x63   : > { %1747 = shalt.err (!%p1744_p6)
}
  0x64   : > { %s3110_s5 = scalar_lea.sflag [#allocation9], %s2419_s6  ;;  %p3111_p5 = scmp.lt.s32.totalorder %s2138_s10, 7 }
  0x65   : > { %1516 = dma.hbm_to_vmem [thread:$0]  (!%p2412_p10), %s2425_s11, 512, %s2429_s23, %s3110_s5  }
  0x66   : > { %p3112_p9 = scmp.ge.s32.totalorder %s2138_s10, 1  ;;  %s159_s16 = sadd.s32 1, %s2106_s29 }
  0x67   : > { %p3115_p3 = scmp.eq.s32.totalorder %s2365_s22, 0  ;;  %p166_p4 = scmp.ne.s32.totalorder %s2106_s29, %s2102_s28 }
  0x68   : > { %p2466_p11 = pnand %p3112_p9, %p3111_p5  ;;  %p172_p7 = scmp.ne.s32.totalorder %s2102_s28, %s2098_s27 }
  0x69   : > { %s2474_s21 = scalar_select %p3115_p3, %s2106_s29, %s159_s16  }
  0x6a   : > { %s3113_s20 = scalar_select %p2466_p11, 1, 0 }
  0x6b   : > { %3116 = sst [smem:[#allocation46_spill]] %s2474_s21  ;;  %s577_s19 = sand.u32 1, %s2106_s29  }
  0x6c   : > { %3114 = sst [smem:[#allocation45_spill]] %s3113_s20  ;;  %p3117_p12 = scmp.eq.s32.totalorder %s2138_s10, 0 }
  0x6d   : > { %p3118_p13 = scmp.eq.s32.totalorder %s2332_s7, 0  ;;  %s2489_s11 = sshll.u32 %s577_s19, 3 }
  0x6e   : > { %p168_p2 = por %p166_p4, %p3117_p12  ;;  %s1476_s23 = sshll.u32 %s2345_s15, 7 }
  0x6f   : > { %p2485_p1 = por %p172_p7, %p3118_p13  ;;  %s3121_s3 = sld [smem:[#allocation51_spill]] }
  0x70   : > { %s579_s27 = scalar_lea.vmem [#allocation11], %s2489_s11  ;;  %p3122_p8 = scmp.lt.s32.totalorder %s2138_s10, 6 }
  0x71   : > { %s3119_s30 = scalar_select %p2485_p1, 1, 0 }
  0x72   : > { %s589_s16 = sshll.u32 %s579_s27, 4  ;;  %p2500_p6 = pnand %p3122_p8, %p168_p2  ;;  %s2504_s16 = int_to_ptr.vmem [resolvable:$true] %s589_s16 }
  0x73   : > { %3120 = sst [smem:[#allocation47_spill]] %s3119_s30  ;;  %s2509_s17 = scalar_lea.hbm %s3008_s4, %s1476_s23 }
  0x74   : > { %s3123_s1 = scalar_select %p2500_p6, 1, 0 }
  0x75   : > { %s2495_s22 = scalar_lea.hbm %s3121_s3, %s1476_s23  ;;  %s3056_s5 = scalar_lea.sflag [#allocation12], %s2419_s6 }
  0x76   : > { %s1748_s21 = scalar_lea.hbm %s2495_s22, 128  ;;  %p3059_p9 = pneg %p2500_p6 }
  0x77   : > { %p1749_p5 = scmp.ne.s32.totalorder %s2495_s22, %s1748_s21  ;;  %s1753_s30 = scalar_lea.hbm %s3121_s3, 256 }
  0x78   : > { %p1754_p7 = scmp.lt.u32.totalorder %s2495_s22, %s3121_s3  ;;  %p1755_p12 = scmp.lt.u32.totalorder %s1753_s30, %s1748_s21 }
  0x79   : > { %p1751_p3 = pnand %p3059_p9, %p1749_p5  ;;  %p1757_p13 = scmp.lt.u32.totalorder %s1748_s21, %s2495_s22 }
  0x7a   : > { %p1756_p2 = por %p1755_p12, %p1754_p7 }
  0x7b   : > { %p1752_p4 = pneg %p1751_p3 }
  0x7c   : > { %p1758_p8 = por %p1757_p13, %p1756_p2 }
  0x7e   : > { %p1759_p1 = pnand %p1758_p8, %p1752_p4 }
  0x80   : > { %1762 = shalt.err (!%p1759_p1)
}
  0x81   : > { %s1763_s23 = scalar_lea.vmem %s2504_s16, 128  ;;  %s2141_s29 = smov [#allocation11]  }
  0x82   : > { %p1764_p5 = scmp.ne.s32.totalorder %s2504_s16, %s1763_s23  ;;  %s1768_s15 = sshll.u32 %s2141_s29, 4  ;;  %s1769_s15 = int_to_ptr.vmem [resolvable:$false] %s1768_s15 }
  0x83   : > { %s1770_s28 = scalar_lea.vmem %s1769_s15, 256  ;;  %p1771_p10 = scmp.lt.s32.totalorder %s2504_s16, %s1769_s15 }
  0x84   : > { %p1766_p3 = pnand %p1764_p5, %p3059_p9  ;;  %p1772_p7 = scmp.lt.s32.totalorder %s1770_s28, %s1763_s23 }
  0x86   : > { %p1767_p11 = pneg %p1766_p3  ;;  %p1773_p12 = por %p1772_p7, %p1771_p10 }
  0x88   : > { %p1774_p2 = pnand %p1773_p12, %p1767_p11 }
  0x8a   : > { %1777 = shalt.err (!%p1774_p2)
}
  0x8b   : > { %1522 = dma.hbm_to_vmem [thread:$0]  (!%p2500_p6), %s2495_s22, 128, %s2504_s16, %s3056_s5  }
  0x8c   : > { %p380_p10 = scmp.lt.s32.totalorder %s2130_s9, 2  ;;  %p382_p11 = scmp.lt.s32.totalorder %s3213_s8, 2 }
  0x8d   : > { %s389_s20 = sadd.s32 1, %s2094_s26  ;;  %p396_p1 = scmp.ne.s32.totalorder %s2094_s26, %s2090_s25 }
  0x8e   : > { %s2545_s21 = scalar_select %p380_p10, %s2130_s9, 2 }
  0x8f   : > { %s383_s30 = scalar_select %p382_p11, %s3213_s8, 2 }
  0x90   : > { %p3124_p4 = scmp.eq.s32.totalorder %s2138_s10, 0  ;;  %p402_p8 = scmp.ne.s32.totalorder %s2090_s25, %s2086_s24 }
  0x91   : > { %s2553_s19 = ssub.s32 %s2545_s21, %s383_s30  ;;  %p3125_p5 = scmp.eq.s32.totalorder %s2332_s7, 0 }
  0x92   : > { %p398_p13 = por %p396_p1, %p3124_p4  ;;  %s386_s22 = sor.u32 %s2553_s19, %s2356_s14 }
  0x93   : > { %p2559_p3 = por %p402_p8, %p3125_p5  ;;  %p387_p7 = scmp.eq.s32.totalorder %s386_s22, 0 }
  0x94   : > { %s619_s27 = sand.u32 1, %s2094_s26   ;;  %s1452_s23 = sshll.u32 %s2545_s21, 2 }
  0x95   : > { %s3126_s16 = scalar_select %p2559_p3, 1, 0 }
  0x96   : > { %s2567_s29 = scalar_select %p387_p7, %s2094_s26, %s389_s20  }
  0x97   : > { %s1451_s15 = sshll.u32 %s619_s27, 5  ;;  %s1479_s28 = smul.u32 12, %s2134_s12 }
  0x98   : > { %p3127_p2 = scmp.lt.s32.totalorder %s2138_s10, 6  ;;  %s621_s30 = scalar_lea.vmem [#allocation14], %s1451_s15 }
  0x99   : > { %s629_s14 = sadd.s32 %s1479_s28, %s1452_s23  ;;  %s633_s5 = sshll.u32 %s621_s30, 4  ;;  %s2576_s5 = int_to_ptr.vmem [resolvable:$true] %s633_s5 }
  0x9a   : > { %p2572_p10 = pnand %p3127_p2, %p398_p13  ;;  %s1453_s3 = sshll.u32 %s629_s14, 7 }
  0x9b   : > { %s3129_s13 = sld [smem:[#allocation60_spill]]  ;;  %s3063_s27 = scalar_lea.sflag [#allocation15], %s2419_s6 }
  0x9c   : > { %p1780_p1 = pneg %p2572_p10 }
  0xa1   : > { %s2581_s20 = scalar_lea.hbm %s3129_s13, %s1453_s3  ;;  %s1783_s28 = scalar_lea.hbm %s3129_s13, 3072 }
  0xa2   : > { %s1778_s12 = scalar_lea.hbm %s2581_s20, 512  ;;  %p1784_p8 = scmp.lt.u32.totalorder %s2581_s20, %s3129_s13 }
  0xa3   : > { %p1779_p11 = scmp.ne.s32.totalorder %s2581_s20, %s1778_s12  ;;  %p1785_p5 = scmp.lt.u32.totalorder %s1783_s28, %s1778_s12 }
  0xa4   : > { %p1787_p2 = scmp.lt.u32.totalorder %s1778_s12, %s2581_s20 }
  0xa5   : > { %p1781_p4 = pnand %p1780_p1, %p1779_p11  ;;  %p1786_p7 = por %p1785_p5, %p1784_p8 }
  0xa7   : > { %p1782_p13 = pneg %p1781_p4  ;;  %p1788_p12 = por %p1787_p2, %p1786_p7 }
  0xa9   : > { %p1789_p9 = pnand %p1788_p12, %p1782_p13 }
  0xab   : > { %1792 = shalt.err (!%p1789_p9)
}
  0xac   : > { %s1793_s14 = scalar_lea.vmem %s2576_s5, 512  ;;  %s2142_s30 = smov [#allocation14]  }
  0xad   : > { %p1794_p11 = scmp.ne.s32.totalorder %s2576_s5, %s1793_s14  ;;  %s1798_s22 = sshll.u32 %s2142_s30, 4  ;;  %s1799_s22 = int_to_ptr.vmem [resolvable:$false] %s1798_s22 }
  0xae   : > { %s1800_s23 = scalar_lea.vmem %s1799_s22, 1024  ;;  %p1801_p6 = scmp.lt.s32.totalorder %s2576_s5, %s1799_s22 }
  0xaf   : > { %p1796_p4 = pnand %p1794_p11, %p1780_p1  ;;  %p1802_p8 = scmp.lt.s32.totalorder %s1800_s23, %s1793_s14 }
  0xb1   : > { %p1797_p3 = pneg %p1796_p4  ;;  %p1803_p5 = por %p1802_p8, %p1801_p6 }
  0xb3   : > { %p1804_p7 = pnand %p1803_p5, %p1797_p3 }
  0xb5   : > { %1807 = shalt.err (!%p1804_p7)
}
  0xb6   : > { %s3130_s12 = sld [smem:[#allocation44_spill]]  ;;  %s3131_s15 = sld [smem:[#allocation33_spill]] }
  0xb7   : > { %1528 = dma.hbm_to_vmem [thread:$0]  (!%p2572_p10), %s2581_s20, 512, %s2576_s5, %s3063_s27  }
  0xb8   : > { %s3132_s3 = sld [smem:[#allocation48_spill]] }
  0xbc   : > { %s510_s14 = scalar_lea.vmem [#allocation5], %s3130_s12  ;;  %s3133_s22 = sand.u32 1, %s3131_s15  }
  0xbd   : > { %s522_s24 = sshll.u32 %s510_s14, 4  ;;  %s507_s23 = scalar_lea.sflag [#allocation6], %s3133_s22  ;;  %s523_s24 = int_to_ptr.vmem [resolvable:$true] %s522_s24 }
  0xbe   : > { %s2615_s30 = scalar_lea.hbm %s3132_s3, %s2416_s18  ;;  %s1813_s28 = scalar_lea.hbm %s3132_s3, 2048 }
  0xbf   : > { %s1808_s13 = scalar_lea.hbm %s2615_s30, 512  ;;  %p1814_p12 = scmp.lt.u32.totalorder %s2615_s30, %s3132_s3 }
  0xc0   : > { %p1809_p6 = scmp.ne.s32.totalorder %s2615_s30, %s1808_s13  ;;  %p1815_p10 = scmp.lt.u32.totalorder %s1813_s28, %s1808_s13 }
  0xc1   : > { %p1817_p13 = scmp.lt.u32.totalorder %s1808_s13, %s2615_s30 }
  0xc2   : > { %p1811_p9 = pnand %p1809_p6, %p2437_p0  ;;  %p1816_p1 = por %p1815_p10, %p1814_p12 }
  0xc4   : > { %p1812_p3 = pneg %p1811_p9  ;;  %p1818_p2 = por %p1817_p13, %p1816_p1 }
  0xc6   : > { %p1819_p11 = pnand %p1818_p2, %p1812_p3 }
  0xc8   : > { %1822 = shalt.err (!%p1819_p11)
}
  0xc9   : > { %s1823_s15 = scalar_lea.vmem %s523_s24, 512  ;;  %s2143_s14 = smov [#allocation5]  }
  0xca   : > { %p1824_p4 = scmp.ne.s32.totalorder %s523_s24, %s1823_s15  ;;  %s1828_s22 = sshll.u32 %s2143_s14, 4  ;;  %s1829_s22 = int_to_ptr.vmem [resolvable:$false] %s1828_s22 }
  0xcb   : > { %s1830_s5 = scalar_lea.vmem %s1829_s22, 1024  ;;  %p1831_p7 = scmp.lt.s32.totalorder %s523_s24, %s1829_s22 }
  0xcc   : > { %p1826_p8 = pnand %p1824_p4, %p2437_p0  ;;  %p1832_p6 = scmp.lt.s32.totalorder %s1830_s5, %s1823_s15 }
  0xce   : > { %p1827_p5 = pneg %p1826_p8  ;;  %p1833_p9 = por %p1832_p6, %p1831_p7 }
  0xd0   : > { %p1834_p10 = pnand %p1833_p9, %p1827_p5 }
  0xd2   : > { %1837 = shalt.err (!%p1834_p10)
}
  0xd3   : > { %p3134_p12 = scmp.ne.s32.totalorder %s3107_s2, 0  ;;  %s3135_s20 = sld [smem:[#allocation50_spill]] }
  0xd4   : > { %s556_s15 = scalar_lea.vmem [#allocation10], %s3130_s12  ;;  %s600_s22 = scalar_lea.vmem [#allocation13], %s2489_s11 }
  0xd5   : > { %1513 = dma.hbm_to_vmem [thread:$0]  (!%p3134_p12), %s2615_s30, 512, %s523_s24, %s507_s23  }
  0xd6   : > { %s568_s14 = sshll.u32 %s556_s15, 4  ;;  %s610_s5 = sshll.u32 %s600_s22, 4  ;;  %s2644_s14 = int_to_ptr.vmem [resolvable:$true] %s568_s14  ;;  %s611_s5 = int_to_ptr.vmem [resolvable:$true] %s610_s5 }
  0xd9   : > { %s3136_s8 = smov %s3135_s20  ;;  %s2641_s28 = scalar_lea.hbm %s3135_s20, %s2416_s18 }
  0xda   : > { %s1838_s3 = scalar_lea.hbm %s2641_s28, 512  ;;  %s1843_s18 = scalar_lea.hbm %s3136_s8, 2048 }
  0xdb   : > { %p1839_p3 = scmp.ne.s32.totalorder %s2641_s28, %s1838_s3  ;;  %p1844_p2 = scmp.lt.u32.totalorder %s2641_s28, %s3136_s8 }
  0xdc   : > { %p1845_p11 = scmp.lt.u32.totalorder %s1843_s18, %s1838_s3  ;;  %p1847_p8 = scmp.lt.u32.totalorder %s1838_s3, %s2641_s28 }
  0xdd   : > { %p1841_p1 = pnand %p1839_p3, %p2437_p0 }
  0xde   : > { %p1846_p4 = por %p1845_p11, %p1844_p2 }
  0xdf   : > { %p1842_p13 = pneg %p1841_p1 }
  0xe0   : > { %p1848_p5 = por %p1847_p8, %p1846_p4 }
  0xe2   : > { %p1849_p7 = pnand %p1848_p5, %p1842_p13 }
  0xe4   : > { %1852 = shalt.err (!%p1849_p7)
}
  0xe5   : > { %s1853_s11 = scalar_lea.vmem %s2644_s14, 512  ;;  %s2144_s12 = smov [#allocation10]  }
  0xe6   : > { %p1854_p6 = scmp.ne.s32.totalorder %s2644_s14, %s1853_s11  ;;  %s1858_s27 = sshll.u32 %s2144_s12, 4  ;;  %s1859_s27 = int_to_ptr.vmem [resolvable:$false] %s1858_s27 }
  0xe7   : > { %s1860_s20 = scalar_lea.vmem %s1859_s27, 1024  ;;  %p1861_p3 = scmp.lt.s32.totalorder %s2644_s14, %s1859_s27 }
  0xe8   : > { %p1856_p9 = pnand %p1854_p6, %p2437_p0  ;;  %p1862_p1 = scmp.lt.s32.totalorder %s1860_s20, %s1853_s11 }
  0xea   : > { %p1857_p10 = pneg %p1856_p9  ;;  %p1863_p2 = por %p1862_p1, %p1861_p3 }
  0xec   : > { %p1864_p11 = pnand %p1863_p2, %p1857_p10 }
  0xee   : > { %1867 = shalt.err (!%p1864_p11)
}
  0xef   : > { %s3137_s3 = scalar_lea.sflag [#allocation9], %s2419_s6  ;;  %s1868_s0 = scalar_lea.hbm %s2509_s17, 128 }
  0xf0   : > { %1519 = dma.hbm_to_vmem [thread:$0]  (!%p3134_p12), %s2641_s28, 512, %s2644_s14, %s3137_s3  }
  0xf1   : > { %p1869_p0 = scmp.ne.s32.totalorder %s2509_s17, %s1868_s0  ;;  %p3138_p13 = scmp.ne.s32.totalorder %s3123_s1, 0 }
  0xf2   : > { %s1873_s2 = scalar_lea.hbm %s3008_s4, 256  ;;  %p1874_p7 = scmp.lt.u32.totalorder %s2509_s17, %s3008_s4 }
  0xf3   : > { %p3139_p4 = pneg %p3138_p13  ;;  %p1875_p6 = scmp.lt.u32.totalorder %s1873_s2, %s1868_s0 }
  0xf4   : > { %p1877_p10 = scmp.lt.u32.totalorder %s1868_s0, %s2509_s17 }
  0xf5   : > { %p1871_p8 = pnand %p1869_p0, %p3139_p4  ;;  %p1876_p9 = por %p1875_p6, %p1874_p7 }
  0xf7   : > { %p1872_p5 = pneg %p1871_p8  ;;  %p1878_p3 = por %p1877_p10, %p1876_p9 }
  0xf9   : > { %p1879_p12 = pnand %p1878_p3, %p1872_p5 }
  0xfb   : > { %1882 = shalt.err (!%p1879_p12)
}
  0xfc   : > { %s1883_s28 = scalar_lea.vmem %s611_s5, 128  ;;  %p3140_p2 = pmov %p3139_p4 }
  0xfd   : > { %p1884_p1 = scmp.ne.s32.totalorder %s611_s5, %s1883_s28  ;;  %s2145_s14 = smov [#allocation13]  }
  0xfe   : > { %s1888_s18 = sshll.u32 %s2145_s14, 4  ;;  %s1889_s18 = int_to_ptr.vmem [resolvable:$false] %s1888_s18 }
  0xff   : > { %p1886_p11 = pnand %p1884_p1, %p3140_p2  ;;  %s1890_s23 = scalar_lea.vmem %s1889_s18, 256 }
 0x100   : > { %p1891_p4 = scmp.lt.s32.totalorder %s611_s5, %s1889_s18  ;;  %p1892_p8 = scmp.lt.s32.totalorder %s1890_s23, %s1883_s28 }
 0x101   : > { %p1887_p0 = pneg %p1886_p11 }
 0x102   : > { %p1893_p6 = por %p1892_p8, %p1891_p4 }
 0x104   : > { %p1894_p7 = pnand %p1893_p6, %p1887_p0 }
 0x106   : > { %1897 = shalt.err (!%p1894_p7)
}
 0x107   : > { %s3141_s13 = scalar_lea.sflag [#allocation12], %s2419_s6  ;;  %s3142_s11 = sld [smem:[#allocation29_spill]] }
 0x108   : > { %s3143_s12 = sld [smem:[#allocation28_spill]]  ;;  %s3144_s27 = sld [smem:[#allocation27_spill]] }
 0x109   : > { %1525 = dma.hbm_to_vmem [thread:$0]  (!%p3138_p13), %s2509_s17, 128, %s611_s5, %s3141_s13  }
 0x10a   : > { %p3145_p5 = scmp.eq.s32.totalorder %s2553_s19, 0  ;;  %s1478_s0 = sshll.u32 %s2545_s21, 9 }
 0x10b   : > { %p3146_p3 = scmp.eq.s32.totalorder %s2138_s10, 0  ;;  %p3147_p1 = scmp.eq.s32.totalorder %s2332_s7, 0 }
 0x10c   : > { %s3149_s24 = sld [smem:[#allocation61_spill]]  ;;  %p3151_p13 = scmp.lt.s32.totalorder %s2138_s10, 6 }
 0x10d   : > { %s419_s20 = sadd.s32 1, %s3142_s11  ;;  %s642_s1 = sand.u32 1, %s3142_s11  }
 0x10e   : > { %s2695_s3 = scalar_select %p3145_p5, %s3142_s11, %s419_s20  }
 0x10f   : > { %p426_p9 = scmp.ne.s32.totalorder %s3142_s11, %s3143_s12  ;;  %p432_p10 = scmp.ne.s32.totalorder %s3143_s12, %s3144_s27 }
 0x110   : > { %s1454_s22 = sshll.u32 %s642_s1, 5 }
 0x111   : > { %p428_p12 = por %p426_p9, %p3146_p3  ;;  %p2707_p2 = por %p432_p10, %p3147_p1 }
 0x112   : > { %s3150_s14 = smov %s3149_s24  ;;  %s2714_s17 = scalar_lea.hbm %s3149_s24, %s1478_s0 }
 0x113   : > { %s3148_s15 = scalar_select %p2707_p2, 1, 0 }
 0x114   : > { %p2718_p11 = pnand %p3151_p13, %p428_p12  ;;  %s644_s19 = scalar_lea.vmem [#allocation16], %s1454_s22 }
 0x115   : > { %s654_s5 = sshll.u32 %s644_s19, 4  ;;  %s1898_s28 = scalar_lea.hbm %s2714_s17, 512  ;;  %s655_s5 = int_to_ptr.vmem [resolvable:$true] %s654_s5 }
 0x116   : > { %p1899_p0 = scmp.ne.s32.totalorder %s2714_s17, %s1898_s28  ;;  %p1900_p4 = pneg %p2718_p11 }
 0x117   : > { %s1903_s13 = scalar_lea.hbm %s3150_s14, 1536  ;;  %p1904_p7 = scmp.lt.u32.totalorder %s2714_s17, %s3150_s14 }
 0x118   : > { %p1901_p8 = pnand %p1900_p4, %p1899_p0  ;;  %p1905_p5 = scmp.lt.u32.totalorder %s1903_s13, %s1898_s28 }
 0x119   : > { %p1907_p10 = scmp.lt.u32.totalorder %s1898_s28, %s2714_s17 }
 0x11a   : > { %p1902_p6 = pneg %p1901_p8  ;;  %p1906_p9 = por %p1905_p5, %p1904_p7 }
 0x11c   : > { %p1908_p3 = por %p1907_p10, %p1906_p9 }
 0x11e   : > { %p1909_p12 = pnand %p1908_p3, %p1902_p6 }
 0x120   : > { %1912 = shalt.err (!%p1909_p12)
}
 0x121   : > { %s1913_s27 = scalar_lea.vmem %s655_s5, 512  ;;  %s2146_s20 = smov [#allocation16]  }
 0x122   : > { %p1914_p1 = scmp.ne.s32.totalorder %s655_s5, %s1913_s27  ;;  %s1918_s1 = sshll.u32 %s2146_s20, 4  ;;  %s1919_s1 = int_to_ptr.vmem [resolvable:$false] %s1918_s1 }
 0x123   : > { %s1920_s0 = scalar_lea.vmem %s1919_s1, 1024  ;;  %p1921_p8 = scmp.lt.s32.totalorder %s655_s5, %s1919_s1 }
 0x124   : > { %p1916_p13 = pnand %p1914_p1, %p1900_p4  ;;  %p1922_p2 = scmp.lt.s32.totalorder %s1920_s0, %s1913_s27 }
 0x126   : > { %p1917_p0 = pneg %p1916_p13  ;;  %p1923_p5 = por %p1922_p2, %p1921_p8 }
 0x128   : > { %p1924_p7 = pnand %p1923_p5, %p1917_p0 }
 0x12a   : > { %1927 = shalt.err (!%p1924_p7)
}
 0x12b   : > { %s3153_s22 = scalar_lea.sflag [#allocation15], %s2419_s6  ;;  %s3154_s2 = sld [smem:[#allocation45_spill]] }
 0x12c   : > { %1531 = dma.hbm_to_vmem [thread:$0]  (!%p2718_p11), %s2714_s17, 512, %s655_s5, %s3153_s22  }
 0x131   : > { %p3155_p6 = scmp.ne.s32.totalorder %s3154_s2, 0 }
 0x132   : > { %s3156_s30 = sld [smem:[#allocation32_spill]] (!%p3155_p6)  ;;  %s3157_s24 = sld [smem:[#allocation39_spill]] (!%p3155_p6) }
 0x133   : > { %663 = sbr.rel (%p3155_p6) target bundleno = 1298 (0x512), region = 80 }
 0x138   : > { %s665_s19 = sand.u32 (!%p3155_p6), 1, %s3156_s30   ;;  %p3158_p4 = scmp.ne.s32.totalorder (!%p3155_p6), %s3157_s24, 0 }
 0x139   : > { %s1458_s28 = sshll.u32 (!%p3155_p6), %s665_s19, 5  ;;  %s666_s18 = scalar_lea.sflag (!%p3155_p6), [#allocation6], %s665_s19 }
 0x13a   : > { %s2748_s23 = scalar_lea.vmem [#allocation5], %s1458_s28 }
 0x13b   : > { %2037 = dma.done.wait (%p3158_p4), %s666_s18, 512  }
 0x13c   : > { %2039 = vsyncadd (%p3158_p4), %s666_s18, 4294966784  ;;  %s674_s6 = sand.u32 1, %s2332_s7   ;;  %s2755_s17 = scalar_lea.vmem [#allocation8], %s1458_s28 }
 0x13d   : > { %s675_s21 = scalar_lea.sflag [#allocation9], %s674_s6 }
 0x13e   : > { %2041 = dma.done.wait (%p3158_p4), %s675_s21, 1024  }
 0x13f   : > { %2043 = vsyncadd (%p3158_p4), %s675_s21, 4294966272  ;;  %s3159_s5 = sld [smem:[#allocation30_spill]]  ;;  %s3160_s13 = sld [smem:[#allocation47_spill]] }
 0x140   : > { %s2764_s27 = scalar_lea.vmem [#allocation10], %s1458_s28  ;;  %s693_s20 = scalar_lea.sflag [#allocation12], %s674_s6 }
 0x145   : > { %s694_s11 = sand.u32 1, %s3159_s5   ;;  %p3161_p2 = scmp.ne.s32.totalorder %s3160_s13, 0 }
 0x146   : > { %s2762_s12 = sshll.u32 %s694_s11, 3 }
 0x147   : > { %s696_s1 = scalar_lea.vmem [#allocation11], %s2762_s12 }
 0x148   : > { %2045 = dma.done.wait (%p3161_p2), %s693_s20, 256  }
 0x149   : > { %2047 = vsyncadd (%p3161_p2), %s693_s20, 4294967040  ;;  %s712_s7 = sand.u32 1, %s2090_s25   ;;  %s705_s22 = scalar_lea.vmem [#allocation13], %s2762_s12 }
 0x14a   : > { %s1463_s0 = sshll.u32 %s712_s7, 5  ;;  %s711_s2 = scalar_lea.sflag [#allocation15], %s674_s6 }
 0x14b   : > { %s2773_s30 = scalar_lea.vmem [#allocation14], %s1463_s0  ;;  %p3162_p11 = scmp.ne.s32.totalorder %s3126_s16, 0 }
 0x14d   : > { %2049 = dma.done.wait (%p3162_p11), %s711_s2, 512  }
 0x14e   : > { %2051 = vsyncadd (%p3162_p11), %s711_s2, 4294966784  ;;  %s3163_s24 = sld [smem:[#allocation28_spill]]  ;;  %p3164_p9 = scmp.ne.s32.totalorder %s3148_s15, 0 }
 0x154   : > { %s721_s19 = sand.u32 1, %s3163_s24  }
 0x155   : > { %s1464_s28 = sshll.u32 %s721_s19, 5 }
 0x156   : > { %s2780_s18 = scalar_lea.vmem [#allocation16], %s1464_s28 }
 0x157   : > { %2053 = dma.done.wait (%p3164_p9), %s711_s2, 512  }
 0x158   : > { %2055 = vsyncadd (%p3164_p9), %s711_s2, 4294966784  ;;  %s3165_s21 = sld [smem:[#allocation25_spill]] }
 0x159   : > { %s3166_s13 = sld [smem:[#allocation34_spill]] }
 0x15e   : > { %s797_s6 = sand.u32 1, %s3165_s21  }
 0x15f   : > { %s2789_s5 = sshll.u32 %s797_s6, 3  ;;  %p1466_p10 = scmp.ne.s32.totalorder %s3166_s13, 0 }
 0x160   : > { %s799_s16 = scalar_lea.vmem [#allocation17], %s2789_s5  ;;  %v2147_v0 = vmov (!%p1466_p10), 0.0  }
 0x161   : > { %824 = sbr.rel (%p1466_p10) target bundleno = 360 (0x168), region = 112  ;;  %825 = vst [vmem:[#allocation2] sm:$0xff] (!%p1466_p10), %v2147_v0  ;;  %826 = vst [vmem:[#allocation2 + $0x8] sm:$0xff] (!%p1466_p10), %v2147_v0 }
 0x162   : > { %827 = vst [vmem:[#allocation2 + $0x10] sm:$0xff] (!%p1466_p10), %v2147_v0  ;;  %828 = vst [vmem:[#allocation2 + $0x18] sm:$0xff] (!%p1466_p10), %v2147_v0 }
 0x163   : > { %829 = vst [vmem:[#allocation3] sm:$0xff] (!%p1466_p10), %v2147_v0  ;;  %830 = vst [vmem:[#allocation4] sm:$0xff] (!%p1466_p10), %v2147_v0 }
 0x164   : > { %831 = vst [vmem:[#allocation4 + $0x8] sm:$0xff] (!%p1466_p10), %v2147_v0  ;;  %832 = vst [vmem:[#allocation4 + $0x10] sm:$0xff] (!%p1466_p10), %v2147_v0 }
 0x165   : > { %833 = vst [vmem:[#allocation4 + $0x18] sm:$0xff] (!%p1466_p10), %v2147_v0 }
 0x168 PF: > { %s3167_s15 = sld [smem:[#allocation34_spill]] }
 0x16e   : > { %p834_p3 = scmp.lt.s32.totalorder %s3167_s15, 2  ;;  %p1467_p12 = scmp.ge.s32.totalorder %s3167_s15, 2 }
 0x16f   : > { %v838_v1 = vld [vmem:[%s2764_s27] sm:$0xff] (!%p1467_p12)  ;;  %v839_v6 = vld [vmem:[%s2764_s27 + $0x8] sm:$0xff] (!%p1467_p12)  ;;  %v840_v10 = vld [vmem:[%s2764_s27 + $0x10] sm:$0xff] (!%p1467_p12) }
 0x170   : > { %837 = sbr.rel (%p1467_p12) target bundleno = 382 (0x17e), region = 116  ;;  %v842_v2 = vld [vmem:[%s2748_s23] sm:$0xff] (!%p1467_p12)  ;;  %v843_v7 = vld [vmem:[%s2748_s23 + $0x8] sm:$0xff] (!%p1467_p12)  ;;  %v858_v11 = vld [vmem:[#allocation2] sm:$0xff] (!%p1467_p12) }
 0x171   : > { %v850_v3 = vld [vmem:[%s2755_s17] sm:$0xff] (!%p1467_p12)  ;;  %v846_v4 = vsub.f32 (!%p1467_p12), %v842_v2, %v838_v1  ;;  %v847_v8 = vsub.f32 (!%p1467_p12), %v843_v7, %v839_v6  ;;  %v851_v9 = vld [vmem:[%s2755_s17 + $0x8] sm:$0xff] (!%p1467_p12)  ;;  %v844_v15 = vld [vmem:[%s2748_s23 + $0x10] sm:$0xff] (!%p1467_p12) }
 0x172   : > { %v854_v5 = vsub.f32 (!%p1467_p12), %v850_v3, %v838_v1  ;;  %v855_v14 = vsub.f32 (!%p1467_p12), %v851_v9, %v839_v6  ;;  %v852_v16 = vld [vmem:[%s2755_s17 + $0x10] sm:$0xff] (!%p1467_p12)  ;;  %v848_v18 = vsub.f32 (!%p1467_p12), %v844_v15, %v840_v10  ;;  %v841_v20 = vld [vmem:[%s2764_s27 + $0x18] sm:$0xff] (!%p1467_p12)  ;;  %v859_v27 = vld [vmem:[#allocation2 + $0x8] sm:$0xff] (!%p1467_p12) }
 0x173   : > { %v862_v12 = vmul.f32 (!%p1467_p12), %v846_v4, %v846_v4  ;;  %v863_v17 = vmul.f32 (!%p1467_p12), %v847_v8, %v847_v8  ;;  %v856_v19 = vsub.f32 (!%p1467_p12), %v852_v16, %v840_v10  ;;  %v845_v21 = vld [vmem:[%s2748_s23 + $0x18] sm:$0xff] (!%p1467_p12)  ;;  %v860_v32 = vld [vmem:[#allocation2 + $0x10] sm:$0xff] (!%p1467_p12)  ;;  %v861_v36 = vld [vmem:[#allocation2 + $0x18] sm:$0xff] (!%p1467_p12) }
 0x174   : > { %v866_v13 = vmul.f32 (!%p1467_p12), %v854_v5, %v854_v5  ;;  %v853_v22 = vld [vmem:[%s2755_s17 + $0x18] sm:$0xff] (!%p1467_p12)  ;;  %v867_v24 = vmul.f32 (!%p1467_p12), %v855_v14, %v855_v14  ;;  %v849_v25 = vsub.f32 (!%p1467_p12), %v845_v21, %v841_v20  ;;  %v864_v28 = vmul.f32 (!%p1467_p12), %v848_v18, %v848_v18 }
 0x175   : > { %v857_v26 = vsub.f32 (!%p1467_p12), %v853_v22, %v841_v20  ;;  %v868_v29 = vmul.f32 (!%p1467_p12), %v856_v19, %v856_v19 }
 0x176   : > { %v870_v23 = vadd.f32 (!%p1467_p12), %v866_v13, %v862_v12  ;;  %v871_v31 = vadd.f32 (!%p1467_p12), %v867_v24, %v863_v17  ;;  %v865_v33 = vmul.f32 (!%p1467_p12), %v849_v25, %v849_v25 }
 0x177   : > { %v869_v34 = vmul.f32 %v857_v26, %v857_v26  ;;  %v872_v35 = vadd.f32 %v868_v29, %v864_v28 }
 0x178   : > { %v878_v30 = vadd.f32 %v870_v23, %v858_v11  ;;  %v879_v37 = vadd.f32 %v871_v31, %v859_v27 }
 0x179   : > { %v873_v38 = vadd.f32 %v869_v34, %v865_v33  ;;  %v880_v39 = vadd.f32 %v872_v35, %v860_v32 }
 0x17a   : > { %882 = vst [vmem:[#allocation2] sm:$0xff] %v878_v30  ;;  %883 = vst [vmem:[#allocation2 + $0x8] sm:$0xff] %v879_v37 }
 0x17b   : > { %v881_v40 = vadd.f32 %v873_v38, %v861_v36  ;;  %884 = vst [vmem:[#allocation2 + $0x10] sm:$0xff] %v880_v39 }
 0x17d   : > { %885 = vst [vmem:[#allocation2 + $0x18] sm:$0xff] %v881_v40 }
 0x17e PF: > { %s3168_s23 = sld [smem:[#allocation35_spill]] }
 0x184   : > { %p886_p1 = scmp.eq.s32.totalorder %s3168_s23, 0 }
 0x186   : > { %p887_p13 = pnand %p886_p1, %p834_p3 }
 0x187   : > { %v891_v41 = vld [vmem:[%s696_s1] sm:$0xff] (!%p887_p13)  ;;  %v892_v47 = vld [vmem:[%s705_s22] sm:$0xff] (!%p887_p13) }
 0x188   : > { %890 = sbr.rel (%p887_p13) target bundleno = 429 (0x1ad), region = 120  ;;  %v897_v42 = vand.u32 (!%p887_p13), 2147483647, %v891_v41  ;;  %v894_v48 = vmax.f32 (!%p887_p13), %v891_v41, 0.0  ;;  %v895_v49 = vmul.f32 (!%p887_p13), %v892_v47, %v891_v41  ;;  %v893_v53 = vld [vmem:[#allocation3] sm:$0xff] (!%p887_p13) }
 0x18a   : > { %v898_v43 = vsub.f32 (!%p887_p13), 0.0, %v897_v42  ;;  %v896_v50 = vsub.f32 (!%p887_p13), %v894_v48, %v895_v49 }
 0x18c   : > { %v899_v44 = vmul.f32 (!%p887_p13), 1.442695, %v898_v43 }
 0x18e   : > { %1701 = vpow2.f32 (!%p887_p13), %v899_v44 }
 0x198   : > { %v1702_v45 = vpop.eup %1701 }
 0x199   : > { %v901_v46 = vadd.f32 1.0, %v1702_v45 }
 0x19b   : > { %1703 = vlog2.f32 %v901_v46 }
 0x1a5   : > { %v1704_v51 = vpop.eup %1703 }
 0x1a6   : > { %v903_v52 = vmul.f32 0.6931472, %v1704_v51 }
 0x1a8   : > { %v904_v54 = vadd.f32 %v903_v52, %v896_v50 }
 0x1aa   : > { %v905_v55 = vadd.f32 %v904_v54, %v893_v53 }
 0x1ac   : > { %906 = vst [vmem:[#allocation3] sm:$0xff] %v905_v55 }
 0x1ad PF: > { %s3170_s11 = sld [smem:[#allocation34_spill]] }
 0x1b3   : > { %p1468_p0 = scmp.ge.s32.totalorder %s3170_s11, 3 }
 0x1b4   : > { %v911_v56 = vld [vmem:[%s2773_s30] sm:$0xff] (!%p1468_p0)  ;;  %v912_v60 = vld [vmem:[%s2773_s30 + $0x8] sm:$0xff] (!%p1468_p0)  ;;  %v913_v0 = vld [vmem:[%s2773_s30 + $0x10] sm:$0xff] (!%p1468_p0) }
 0x1b5   : > { %910 = sbr.rel (%p1468_p0) target bundleno = 447 (0x1bf), region = 124  ;;  %v915_v57 = vld [vmem:[#allocation4] sm:$0xff] (!%p1468_p0)  ;;  %v916_v61 = vld [vmem:[#allocation4 + $0x8] sm:$0xff] (!%p1468_p0)  ;;  %v917_v1 = vld [vmem:[#allocation4 + $0x10] sm:$0xff] (!%p1468_p0) }
 0x1b6   : > { %v923_v58 = vld [vmem:[%s2780_s18] sm:$0xff] (!%p1468_p0)  ;;  %v924_v62 = vld [vmem:[%s2780_s18 + $0x8] sm:$0xff] (!%p1468_p0)  ;;  %v925_v2 = vld [vmem:[%s2780_s18 + $0x10] sm:$0xff] (!%p1468_p0) }
 0x1b7   : > { %v927_v59 = vmul.f32 (!%p1468_p0), %v923_v58, %v911_v56  ;;  %v928_v63 = vmul.f32 (!%p1468_p0), %v924_v62, %v912_v60  ;;  %v929_v4 = vmul.f32 (!%p1468_p0), %v925_v2, %v913_v0  ;;  %v914_v5 = vld [vmem:[%s2773_s30 + $0x18] sm:$0xff] (!%p1468_p0) }
 0x1b8   : > { %v918_v6 = vld [vmem:[#allocation4 + $0x18] sm:$0xff] (!%p1468_p0) }
 0x1b9   : > { %v931_v3 = vadd.f32 (!%p1468_p0), %v927_v59, %v915_v57  ;;  %v926_v7 = vld [vmem:[%s2780_s18 + $0x18] sm:$0xff] (!%p1468_p0)  ;;  %v932_v8 = vadd.f32 (!%p1468_p0), %v928_v63, %v916_v61  ;;  %v933_v10 = vadd.f32 (!%p1468_p0), %v929_v4, %v917_v1 }
 0x1ba   : > { %v930_v9 = vmul.f32 (!%p1468_p0), %v926_v7, %v914_v5 }
 0x1bb   : > { %935 = vst [vmem:[#allocation4] sm:$0xff] (!%p1468_p0), %v931_v3  ;;  %936 = vst [vmem:[#allocation4 + $0x8] sm:$0xff] (!%p1468_p0), %v932_v8 }
 0x1bc   : > { %v934_v11 = vadd.f32 %v930_v9, %v918_v6  ;;  %937 = vst [vmem:[#allocation4 + $0x10] sm:$0xff] %v933_v10 }
 0x1be   : > { %938 = vst [vmem:[#allocation4 + $0x18] sm:$0xff] %v934_v11 }
 0x1bf PF: > { %s3171_s12 = sld [smem:[#allocation34_spill]] }
 0x1c5   : > { %p1469_p8 = scmp.ne.s32.totalorder %s3171_s12, 2 }
 0x1c6   : > { %s3172_s1 = sld [smem:[#allocation53_spill]] (!%p1469_p8)  ;;  %vm1021_vm0 = vcmask (!%p1469_p8), 25600   ;;  %s3173_s22 = sld [smem:[#allocation55_spill]] (!%p1469_p8)  ;;  %vm1076_vm1 = vcmask (!%p1469_p8), 33792   ;;  %v965_v18 = vlaneseq (!%p1469_p8)  ;;  %v2148_v50 = vmov (!%p1469_p8), 1983009808  }
 0x1c7   : > { %942 = sbr.rel (%p1469_p8) target bundleno = 1271 (0x4f7), region = 128  ;;  %s3174_s24 = sld [smem:[#allocation52_spill]] (!%p1469_p8)  ;;  %v963_v51 = vunpack.c.l.s4 (!%p1469_p8), %v2148_v50  ;;  %v959_v55 = vld [vmem:[#allocation3] sm:$0xff] (!%p1469_p8)  ;;  %v944_v59 = vld [vmem:[#allocation2 + $0x8] sm:$0xff] (!%p1469_p8)  ;;  %vm982_vm6 = vcmask (!%p1469_p8), 1041408   ;;  %v945_v4 = vld [vmem:[#allocation2 + $0x10] sm:$0xff] (!%p1469_p8) }
 0x1c8   : > { %v2841_v19 = vand.u32 (!%p1469_p8), 127, %v965_v18  ;;  %s3175_s18 = sld [smem:[#allocation54_spill]] (!%p1469_p8)  ;;  %v2864_v52 = vshrl.u32 (!%p1469_p8), %v965_v18, 7  ;;  %v943_v58 = vld [vmem:[#allocation2] sm:$0xff] (!%p1469_p8)  ;;  %v961_v60 = vcombine.high (!%p1469_p8), %v959_v55, %v959_v55  ;;  %v999_v8 = vld [vmem:[#allocation4] sm:$0xff] (!%p1469_p8)  ;;  %v1000_v9 = vld [vmem:[#allocation4 + $0x8] sm:$0xff] (!%p1469_p8) }
 0x1c9   : > { %v964_v53 = vunpack.c.0.s8 (!%p1469_p8), %v963_v51  ;;  %v947_v2 = vadd.f32 (!%p1469_p8), %v944_v59, %v943_v58  ;;  %v1003_v18 = vadd.f32 (!%p1469_p8), %v1000_v9, %v999_v8  ;;  %s3176_s15 = sld [smem:[#allocation57_spill]] (!%p1469_p8)  ;;  %s3177_s11 = sld [smem:[#allocation59_spill]] (!%p1469_p8)  ;;  %vm1062_vm9 = vcmask (!%p1469_p8), 1024  }
 0x1ca   : > { %s3178_s20 = sld [smem:[#allocation56_spill]] (!%p1469_p8)  ;;  %s3179_s0 = sld [smem:[#allocation58_spill]] (!%p1469_p8)  ;;  %vm1138_vm10 = vcmask (!%p1469_p8), 123904   ;;  %vm1171_vm11 = vcmp.eq.s32.totalorder (!%p1469_p8), %v2864_v52, 0  ;;  %vm1174_vm12 = vcmp.eq.s32.totalorder (!%p1469_p8), %v2864_v52, 1  ;;  %vm1177_vm13 = vcmp.eq.s32.totalorder (!%p1469_p8), %v2864_v52, 2 }
 0x1cb   : > { %v967_v54 = vsub.s32 (!%p1469_p8), %v964_v53, %v2864_v52  ;;  %vm1180_vm14 = vcmp.eq.s32.totalorder (!%p1469_p8), %v2864_v52, 3  ;;  %vm1183_vm15 = vcmp.eq.s32.totalorder (!%p1469_p8), %v2864_v52, 4 }
 0x1cc   : > { %v1018_v12 = vld [vmem:[%s3172_s1] sm:$0x3] (!%p1469_p8) }
 0x1cd   : > { %v1075_v13 = vld [vmem:[%s3173_s22] sm:$0x3] (!%p1469_p8)  ;;  %v1022_v14 = vsel (!%p1469_p8), %vm1021_vm0, %v1018_v12, -inf  ;;  %v968_v56 = vrot.slane (!%p1469_p8), %v959_v55, %v967_v54  ;;  %v975_v5 = vrot.slane (!%p1469_p8), %v961_v60, %v967_v54 }
 0x1ce   : > { %1023 = vmax.xlane.f32.xlu0 %v1022_v14  ;;  %v1077_v15 = vsel %vm1076_vm1, %v1075_v13, -inf  ;;  %v2837_v16 = vld [vmem:[%s3174_s24] sm:$0x3]  ;;  %s1015_s2 = scalar_select %p886_p1, 1, 0 }
 0x1cf   : > { %v1045_v17 = vsel %vm1021_vm0, %v2837_v16, -inf  ;;  %v2850_v30 = vld [vmem:[%s3175_s18] sm:$0x3]  ;;  %v976_v61 = vcombine.high %v968_v56, %v968_v56  ;;  %v983_v6 = vsel %vm982_vm6, %v968_v56, 0.0 }
 0x1d0   : > { %v1100_v31 = vsel %vm1076_vm1, %v2850_v30, -inf  ;;  %s1016_s19 = scvt.s32.f32 %s1015_s2 }
 0x1d1   : > { %v984_v7 = vsel %vm982_vm6, %v976_v61, 0.0 }
 0x1d2   : > { %1078 = vmax.xlane.f32.xlu0 %v1077_v15  ;;  %v948_v15 = vadd.f32 %v947_v2, %v945_v4 }
 0x1d6   : > { %1046 = vmax.xlane.f32.xlu0 %v1045_v17  ;;  %v985_v17 = vadd.f32 %v984_v7, %v983_v6 }
 0x25b   : > { %v1024_v20 = vpop.xlane.xlu0 %1023 }
 0x25c   : > { %vm1025_vm2 = vcmp.eq.f32.partialorder %v1018_v12, %v1024_v20 }
 0x25d   : > { %v1026_v21 = vsel %vm1025_vm2, %v2841_v19, 2147483647 }
 0x25e   : > { %v1027_v22 = vsel %vm1021_vm0, %v1026_v21, 2147483647 }
 0x25f   : > { %v1079_v23 = vpop.xlane.xlu0 %1078  ;;  %v1029_v24 = vshra.s32 %v1027_v22, 16  ;;  %v1028_v35 = vand.u32 65535, %v1027_v22  ;;  %v946_v22 = vld [vmem:[#allocation2 + $0x18] sm:$0xff] }
 0x260   : > { %vm1080_vm3 = vcmp.eq.f32.partialorder %v1075_v13, %v1079_v23  ;;  %v2149_v13 = vmov 0.0   ;;  %v977_v23 = vcombine.high %v975_v5, %v975_v5 }
 0x261   : > { %v1081_v25 = vsel %vm1080_vm3, %v2841_v19, 2147483647  ;;  %v1031_v26 = vcvt.s32.f32 %v1029_v24  ;;  %v1030_v37 = vcvt.s32.f32 %v1028_v35  ;;  %v986_v24 = vsel %vm982_vm6, %v975_v5, 0.0  ;;  %v1002_v35 = vld [vmem:[#allocation4 + $0x18] sm:$0xff] }
 0x262   : > { %v1082_v27 = vsel %vm1076_vm1, %v1081_v25, 2147483647  ;;  %v1001_v25 = vld [vmem:[#allocation4 + $0x10] sm:$0xff] }
 0x263   : > { %1032 = vmin.xlane.f32.xlu1 %v1031_v26  ;;  %v1084_v28 = vshra.s32 %v1082_v27, 16  ;;  %v2854_v32 = vpop.xlane.xlu0 %1046  ;;  %v1083_v38 = vand.u32 65535, %v1082_v27 }
 0x264   : > { %v1048_v33 = vsub.f32 %v2837_v16, %v2854_v32 }
 0x265   : > { %v1086_v29 = vcvt.s32.f32 %v1084_v28  ;;  %v1085_v42 = vcvt.s32.f32 %v1083_v38  ;;  %v949_v28 = vadd.f32 %v948_v15, %v946_v22 }
 0x266   : > { %v1049_v34 = vmul.f32 1.442695, %v1048_v33 }
 0x267   : > { %1087 = vmin.xlane.f32.xlu1 %v1086_v29 }
 0x268   : > { %1706 = vpow2.f32 %v1049_v34  ;;  %v988_v34 = vsel %vm982_vm6, %v977_v23, 0.0 }
 0x26b   : > { %1101 = vmax.xlane.f32.xlu1 %v1100_v31  ;;  %v1004_v31 = vadd.f32 %v1003_v18, %v1001_v25 }
 0x272   : > { %v1707_v39 = vpop.eup %1706 }
 0x273   : > { %v1051_v43 = vsel %vm1021_vm0, %v1707_v39, 0.0 }
 0x2f0   : > { %v1033_v36 = vpop.xlane.xlu1 %1032 }
 0x2f1   : > { %vm1034_vm4 = vcmp.eq.f32.partialorder %v1031_v26, %v1033_v36  ;;  %v1039_v57 = vcvt.f32.s32 %v1033_v36 }
 0x2f2   : > { %v1035_v40 = vsel %vm1034_vm4, %v1030_v37, inf  ;;  %v1005_v37 = vadd.f32 %v1004_v31, %v1002_v35 }
 0x2f3   : > { %1036 = vmin.xlane.f32.xlu0 %v1035_v40  ;;  %v1040_v63 = vshll.u32 %v1039_v57, 16 }
 0x2f4   : > { %v1088_v41 = vpop.xlane.xlu1 %1087 }
 0x2f5   : > { %vm1089_vm5 = vcmp.eq.f32.partialorder %v1086_v29, %v1088_v41  ;;  %v1094_v0 = vcvt.f32.s32 %v1088_v41  ;;  %v987_v29 = vadd.f32 %v986_v24, %v985_v17 }
 0x2f6   : > { %v1090_v44 = vsel %vm1089_vm5, %v1085_v42, inf  ;;  %v1128_v42 = vld [vmem:[%s3178_s20] sm:$0x3] }
 0x2f7   : > { %1091 = vmin.xlane.f32.xlu1 %v1090_v44  ;;  %1052 = vadd.xlane.f32.xlu0 %v1051_v43  ;;  %v1095_v11 = vshll.u32 %v1094_v0, 16  ;;  %v989_v36 = vadd.f32 %v988_v34, %v987_v29 }
 0x2f8   : > { %v2859_v45 = vpop.xlane.xlu1 %1101 }
 0x2f9   : > { %v1103_v46 = vsub.f32 %v2850_v30, %v2859_v45 }
 0x2fb   : > { %v1104_v47 = vmul.f32 1.442695, %v1103_v46  ;;  %v1133_v46 = vmul.f32 %v1128_v42, %v1128_v42 }
 0x2fd   : > { %1708 = vpow2.f32 %v1104_v47  ;;  %v1130_v47 = vld [vmem:[%s3179_s0] sm:$0x3] }
 0x2fe   : > { %v1152_v53 = vmul.f32 %v1130_v47, %v1130_v47 }
 0x307   : > { %v1709_v48 = vpop.eup %1708 }
 0x308   : > { %v1106_v49 = vsel %vm1076_vm1, %v1709_v48, 0.0 }
 0x309   : > { %1107 = vadd.xlane.f32.xlu1 %v1106_v49 }
 0x380   : > { %v1037_v62 = vpop.xlane.xlu0 %1036 }
 0x381   : > { %v1038_v1 = vcvt.f32.s32 %v1037_v62 }
 0x383   : > { %v1041_v3 = vadd.s32 %v1040_v63, %v1038_v1 }
 0x384   : > { %v1092_v10 = vpop.xlane.xlu1 %1091  ;;  %v1053_v38 = vpop.xlane.xlu0 %1052 }
 0x385   : > { %v1093_v12 = vcvt.f32.s32 %v1092_v10  ;;  %vm1042_vm7 = vcmp.eq.s32.totalorder %v2841_v19, %v1041_v3  ;;  %1710 = vlog2.f32 %v1053_v38 }
 0x386   : > { %v1470_v14 = vsel %vm1042_vm7, 1.0, %v2149_v13 }
 0x387   : > { %v1096_v20 = vadd.s32 %v1095_v11, %v1093_v12  ;;  %v1057_v21 = vmul.f32 %v1470_v14, %v2837_v16 }
 0x389   : > { %v1058_v26 = vsel %vm1021_vm0, %v1057_v21, 0.0  ;;  %vm1097_vm8 = vcmp.eq.s32.totalorder %v2841_v19, %v1096_v20  ;;  %v1129_v19 = vld [vmem:[%s3176_s15] sm:$0x3]  ;;  %vm1186_vm0 = vcmp.eq.s32.totalorder %v2864_v52, 5 }
 0x38a   : > { %1059 = vadd.xlane.f32.xlu0 %v1058_v26  ;;  %v1471_v27 = vsel %vm1097_vm8, 1.0, %v2149_v13  ;;  %v1135_v40 = vmul.f32 1.442695, %v1129_v19  ;;  %v1132_v44 = vadd.f32 1.0, %v1129_v19 }
 0x38b   : > { %v1112_v33 = vmul.f32 %v1471_v27, %v2850_v30  ;;  %v1131_v30 = vld [vmem:[%s3177_s11] sm:$0x3] }
 0x38c   : > { %v1154_v41 = vmul.f32 1.442695, %v1131_v30  ;;  %v1134_v50 = vsub.f32 %v1132_v44, %v1133_v46  ;;  %v1151_v51 = vadd.f32 1.0, %v1131_v30 }
 0x38d   : > { %v1113_v16 = vsel %vm1076_vm1, %v1112_v33, 0.0  ;;  %vm1189_vm1 = vcmp.eq.s32.totalorder %v2864_v52, 6 }
 0x38e   : > { %1114 = vadd.xlane.f32.xlu1 %v1113_v16  ;;  %950 = vadd.xlane.f32.xlu0 %v949_v28  ;;  %v1153_v60 = vsub.f32 %v1151_v51, %v1152_v53 }
 0x38f   : > { %v1711_v43 = vpop.eup %1710 }
 0x390   : > { %v1055_v48 = vmul.f32 0.6931472, %v1711_v43 }
 0x392   : > { %990 = vadd.xlane.f32.xlu1 %v989_v36  ;;  %1006 = vadd.xlane.f32.xlu0 %v1005_v37  ;;  %v1056_v56 = vadd.f32 %v1055_v48, %v2854_v32 }
 0x396   : > { %v1108_v39 = vpop.xlane.xlu1 %1107 }
 0x397   : > { %1712 = vlog2.f32 %v1108_v39 }
 0x398   : > { %1714 = vpow2.f32 %v1135_v40 }
 0x399   : > { %1716 = vpow2.f32 %v1154_v41 }
 0x3a1   : > { %v1713_v49 = vpop.eup %1712 }
 0x3a2   : > { %v1715_v54 = vpop.eup %1714  ;;  %v1110_v55 = vmul.f32 0.6931472, %v1713_v49 }
 0x3a3   : > { %v1137_v59 = vsub.f32 %v1134_v50, %v1715_v54  ;;  %v1717_v61 = vpop.eup %1716 }
 0x3a4   : > { %v1111_v62 = vadd.f32 %v1110_v55, %v2859_v45  ;;  %v1156_v4 = vsub.f32 %v1153_v60, %v1717_v61 }
 0x3a5   : > { %v1139_v3 = vsel %vm1138_vm10, %v1137_v59, 0.0 }
 0x3a6   : > { %v1157_v9 = vsel %vm1138_vm10, %v1156_v4, 0.0 }
 0x417   : > { %v1060_v57 = vpop.xlane.xlu0 %1059 }
 0x418   : > { %v1061_v58 = vsub.f32 %v1056_v56, %v1060_v57 }
 0x41a   : > { %v1063_v63 = vsel %vm1062_vm9, %v1061_v58, 0.0 }
 0x41b   : > { %v1115_v0 = vpop.xlane.xlu1 %1114  ;;  %1064 = vadd.xlane.f32.xlu1 %v1063_v63  ;;  %v951_v1 = vpop.xlane.xlu0 %950 }
 0x41c   : > { %v1116_v2 = vsub.f32 %v1111_v62, %v1115_v0  ;;  %v952_v5 = vrot.slane %v951_v1, 4 }
 0x41e   : > { %v1117_v6 = vsel %vm1062_vm9, %v1116_v2, 0.0  ;;  %v953_v32 = vadd.f32 %v952_v5, %v951_v1 }
 0x41f   : > { %1140 = vadd.xlane.f32.xlu1 %v1139_v3  ;;  %1118 = vadd.xlane.f32.xlu0 %v1117_v6  ;;  %v991_v7 = vpop.xlane.xlu1 %990  ;;  %v1007_v8 = vpop.xlane.xlu0 %1006 }
 0x420   : > { %v992_v10 = vrot.slane %v991_v7, 4  ;;  %v1008_v11 = vrot.slane %v1007_v8, 4  ;;  %v954_v45 = vrot.slane %v953_v32, 2 }
 0x422   : > { %v993_v12 = vadd.f32 %v992_v10, %v991_v7  ;;  %v1009_v13 = vadd.f32 %v1008_v11, %v1007_v8  ;;  %v955_v17 = vadd.f32 %v954_v45, %v953_v32 }
 0x423   : > { %1158 = vadd.xlane.f32.xlu0 %v1157_v9 }
 0x424   : > { %v994_v14 = vrot.slane %v993_v12, 2  ;;  %v1010_v15 = vrot.slane %v1009_v13, 2  ;;  %v956_v20 = vrot.slane %v955_v17, 1 }
 0x426   : > { %v995_v18 = vadd.f32 %v994_v14, %v993_v12  ;;  %v957_v22 = vadd.f32 %v956_v20, %v955_v17  ;;  %v1011_v23 = vadd.f32 %v1010_v15, %v1009_v13 }
 0x428   : > { %v996_v21 = vrot.slane %v995_v18, 1  ;;  %1480 = vpush %v957_v22  ;;  %v1012_v25 = vrot.slane %v1011_v23, 1 }
 0x42a   : > { %v997_v24 = vadd.f32 %v996_v21, %v995_v18  ;;  %v1013_v26 = vadd.f32 %v1012_v25, %v1011_v23 }
 0x42c   : > { %1482 = vpush %v997_v24 }
 0x42d   : > { %1484 = vpush %v1013_v26 }
 0x459   : > { %s1481_s30 = spop %1480 }
 0x45a   : > { %v1172_v56 = vstv %s1481_s30 }
 0x45b   : > { %v1173_v57 = vsel %vm1171_vm11, %v1172_v56, 0.0 }
 0x45d   : > { %s1483_s24 = spop %1482 }
 0x45e   : > { %s2895_s28 = spop %1484  ;;  %v1175_v58 = vstv %s1483_s24 }
 0x45f   : > { %v1176_v61 = vsel %vm1174_vm12, %v1175_v58, %v1173_v57  ;;  %v1190_v3 = vstv %s2895_s28 }
 0x4a8   : > { %v1065_v27 = vpop.xlane.xlu1 %1064 }
 0x4a9   : > { %v1066_v28 = vrot.slane %v1065_v27, 4 }
 0x4ab   : > { %v1067_v29 = vadd.f32 %v1066_v28, %v1065_v27 }
 0x4ac   : > { %v1141_v31 = vpop.xlane.xlu1 %1140  ;;  %v1119_v33 = vpop.xlane.xlu0 %1118 }
 0x4ad   : > { %v1068_v34 = vrot.slane %v1067_v29, 2  ;;  %v1142_v35 = vrot.slane %v1141_v31, 4  ;;  %v1120_v16 = vrot.slane %v1119_v33, 4 }
 0x4af   : > { %v1143_v36 = vadd.f32 %v1142_v35, %v1141_v31  ;;  %v1121_v37 = vadd.f32 %v1120_v16, %v1119_v33  ;;  %v1069_v38 = vadd.f32 %v1068_v34, %v1067_v29 }
 0x4b0   : > { %v1159_v19 = vpop.xlane.xlu0 %1158 }
 0x4b1   : > { %v1144_v39 = vrot.slane %v1143_v36, 2  ;;  %v1122_v40 = vrot.slane %v1121_v37, 2  ;;  %v1160_v30 = vrot.slane %v1159_v19, 4  ;;  %v1070_v41 = vrot.slane %v1069_v38, 1 }
 0x4b3   : > { %v1145_v42 = vadd.f32 %v1144_v39, %v1143_v36  ;;  %v1161_v43 = vadd.f32 %v1160_v30, %v1159_v19  ;;  %v1071_v44 = vadd.f32 %v1070_v41, %v1069_v38  ;;  %v1123_v46 = vadd.f32 %v1122_v40, %v1121_v37 }
 0x4b5   : > { %v1162_v47 = vrot.slane %v1161_v43, 2  ;;  %1486 = vpush %v1071_v44  ;;  %v1124_v48 = vrot.slane %v1123_v46, 1  ;;  %v1146_v49 = vrot.slane %v1145_v42, 1 }
 0x4b7   : > { %v1163_v50 = vadd.f32 %v1162_v47, %v1161_v43  ;;  %v1125_v51 = vadd.f32 %v1124_v48, %v1123_v46  ;;  %v1147_v53 = vadd.f32 %v1146_v49, %v1145_v42 }
 0x4b9   : > { %1488 = vpush %v1125_v51  ;;  %v1164_v54 = vrot.slane %v1163_v50, 1 }
 0x4ba   : > { %1490 = vpush %v1147_v53 }
 0x4bb   : > { %v1165_v55 = vadd.f32 %v1164_v54, %v1163_v50 }
 0x4bd   : > { %1492 = vpush %v1165_v55 }
 0x4e6   : > { %s1487_s18 = spop %1486 }
 0x4e7   : > { %s1073_s21 = smul.f32 %s1487_s18, %s1016_s19 }
 0x4e9   : > { %v1178_v59 = vstv %s1073_s21 }
 0x4ea   : > { %s1489_s13 = spop %1488  ;;  %v1179_v62 = vsel %vm1177_vm13, %v1178_v59, %v1176_v61 }
 0x4eb   : > { %s1127_s15 = smul.f32 %s1489_s13, %s1016_s19  ;;  %s1491_s23 = spop %1490 }
 0x4ec   : > { %s1149_s17 = smul.f32 -0.5, %s1491_s23 }
 0x4ed   : > { %v1181_v60 = vstv %s1127_s15 }
 0x4ee   : > { %s1150_s11 = smul.f32 %s1149_s17, %s1016_s19  ;;  %s1493_s12 = spop %1492  ;;  %v1182_v63 = vsel %vm1180_vm14, %v1181_v60, %v1179_v62 }
 0x4ef   : > { %s1167_s27 = smul.f32 -0.5, %s1493_s12 }
 0x4f0   : > { %v1184_v0 = vstv %s1150_s11 }
 0x4f1   : > { %s1168_s20 = smul.f32 %s1167_s27, %s1016_s19  ;;  %v1185_v1 = vsel %vm1183_vm15, %v1184_v0, %v1182_v63 }
 0x4f3   : > { %v1187_v2 = vstv %s1168_s20 }
 0x4f4   : > { %v1188_v4 = vsel %vm1186_vm0, %v1187_v2, %v1185_v1 }
 0x4f5   : > { %v1191_v5 = vsel %vm1189_vm1, %v1190_v3, %v1188_v4 }
 0x4f6   : > { %1192 = vst [vmem:[%s799_s16] sm:$0xff] %v1191_v5 }
 0x4f7 PF: > { %s3181_s1 = sld [smem:[#allocation35_spill]]  ;;  %s3183_s0 = sld [smem:[#allocation42_spill]] }
 0x4f8   : > { %s3184_s24 = sld [smem:[#allocation62_spill]]  ;;  %s1207_s18 = sshll.u32 %s799_s16, 4  ;;  %s1208_s18 = int_to_ptr.vmem [resolvable:$true] %s1207_s18 }
 0x4f9   : > { %s1194_s28 = scalar_lea.sflag [#allocation7], %s797_s6  ;;  %s1928_s21 = scalar_lea.vmem %s1208_s18, 128 }
 0x4fa   : > { %p1929_p5 = scmp.ne.s32.totalorder %s1208_s18, %s1928_s21  ;;  %s2150_s15 = smov [#allocation17]  }
 0x4fb   : > { %s1932_s23 = sshll.u32 %s2150_s15, 4  ;;  %s1933_s23 = int_to_ptr.vmem [resolvable:$false] %s1932_s23 }
 0x4fc   : > { %s1934_s17 = scalar_lea.vmem %s1933_s23, 256  ;;  %p1935_p2 = scmp.lt.s32.totalorder %s1208_s18, %s1933_s23 }
 0x4fd   : > { %s1473_s22 = sshll.u32 %s3181_s1, 7  ;;  %p3186_p7 = scmp.ne.s32.totalorder %s3183_s0, 0 }
 0x4fe   : > { %s3185_s13 = smov %s3184_s24  ;;  %s2911_s19 = scalar_lea.hbm %s3184_s24, %s1473_s22 }
 0x4ff   : > { %p1930_p6 = pnand %p1929_p5, %p3186_p7  ;;  %p1936_p11 = scmp.lt.s32.totalorder %s1934_s17, %s1928_s21 }
 0x501   : > { %p1931_p4 = pneg %p1930_p6  ;;  %p1937_p9 = por %p1936_p11, %p1935_p2 }
 0x503   : > { %p1938_p10 = pnand %p1937_p9, %p1931_p4 }
 0x505   : > { %1941 = shalt.err (!%p1938_p10)
}
 0x506   : > { %s1942_s6 = scalar_lea.hbm %s2911_s19, 128  ;;  %s1946_s11 = scalar_lea.hbm %s3185_s13, 256 }
 0x507   : > { %p1943_p3 = scmp.ne.s32.totalorder %s2911_s19, %s1942_s6  ;;  %p1947_p13 = scmp.lt.u32.totalorder %s2911_s19, %s3185_s13 }
 0x508   : > { %p1948_p0 = scmp.lt.u32.totalorder %s1946_s11, %s1942_s6  ;;  %p1950_p5 = scmp.lt.u32.totalorder %s1942_s6, %s2911_s19 }
 0x509   : > { %p1944_p12 = pnand %p1943_p3, %p3186_p7 }
 0x50a   : > { %p1949_p8 = por %p1948_p0, %p1947_p13 }
 0x50b   : > { %p1945_p1 = pneg %p1944_p12 }
 0x50c   : > { %p1951_p6 = por %p1950_p5, %p1949_p8 }
 0x50e   : > { %p1952_p4 = pnand %p1951_p6, %p1945_p1 }
 0x510   : > { %1955 = shalt.err (!%p1952_p4)
}
 0x511   : > { %1508 = dma.vmem_to_hbm [thread:$0]  (%p3186_p7), %s1208_s18, 128, %s2911_s19, %s1194_s28  }
 0x512 PF: > { %s3187_s20 = sld [smem:[#allocation24_spill]]  ;;  %s3188_s1 = sld [smem:[#allocation43_spill]] }
 0x513   : > { %p1537_p2 = scmp.ge.s32.totalorder %s2138_s10, 2 }
 0x518   : > { %s1219_s7 = sand.u32 1, %s3187_s20   ;;  %p3189_p11 = scmp.ne.s32.totalorder %s3188_s1, 0 }
 0x519   : > { %s1220_s22 = scalar_lea.sflag [#allocation7], %s1219_s7 }
 0x51a   : > { %p1533_p9 = pnand %p1537_p2, %p3189_p11 }
 0x51c   : > { %2057 = dma.done.wait (!%p1533_p9), %s1220_s22, 128  }
 0x51d   : > { %2059 = vsyncadd (!%p1533_p9), %s1220_s22, 4294967168  ;;  %s40_s10 = sadd.s32 1, %s2138_s10   ;;  %s3191_s18 = sld [smem:[#allocation25_spill]] }
 0x51e   : > { %p2939_p10 = scmp.ge.s32.totalorder %s40_s10, 8   ;;  %s3192_s19 = sld [smem:[#allocation26_spill]] }
 0x51f   : > { %s3193_s20 = sld [smem:[#allocation41_spill]]  ;;  %s3194_s21 = sld [smem:[#allocation28_spill]] }
 0x520   : > { %s3195_s22 = sld [smem:[#allocation29_spill]]  ;;  %s3196_s27 = sld [smem:[#allocation30_spill]] }
 0x521   : > { %s3197_s28 = sld [smem:[#allocation31_spill]]  ;;  %s3199_s30 = sld [smem:[#allocation32_spill]] }
 0x522   : > { %s3198_s0 = sld [smem:[#allocation46_spill]]  ;;  %s3200_s16 = sld [smem:[#allocation33_spill]] }
 0x523   : > { %s3201_s17 = sld [smem:[#allocation40_spill]]  ;;  %s3202_s11 = sld [smem:[#allocation36_spill]] }
 0x524   : > { %s3203_s6 = sld [smem:[#allocation37_spill]]  ;;  %s3204_s12 = sld [smem:[#allocation38_spill]] }
 0x525   : > { %s3205_s23 = smov %s2695_s3  ;;  %s3206_s24 = smov %s2090_s25 }
 0x526   : > { %s3207_s25 = smov %s2094_s26  ;;  %s3208_s26 = smov %s2567_s29 }
 0x527   : > { %s3210_s15 = smov %s2130_s9  ;;  %39 = sbr.rel (!%p2939_p10) target bundleno = 35 (0x23), region = 217 }
 0x528   : > { %s3209_s29 = smov %s3198_s0 }
 0x52a   : > { %s3211_s9 = smov %s3203_s6 }
 0x52e   :  { %1225 = vsyncpa [#allocation6], 1 }
 0x52f   :  { %1227 = vsyncpa [#allocation6 + $0x1], 1 }
 0x530   :  { %1228 = vsyncpa [#allocation9], 1 }
 0x531   :  { %1230 = vsyncpa [#allocation9 + $0x1], 1 }
 0x532   :  { %1231 = vsyncpa [#allocation12], 1 }
 0x533   :  { %1233 = vsyncpa [#allocation12 + $0x1], 1 }
 0x534   :  { %1234 = vsyncpa [#allocation15], 1 }
 0x535   :  { %1236 = vsyncpa [#allocation15 + $0x1], 1 }
 0x536   :  { %1237 = vsyncpa [#allocation7], 1 }
 0x537   :  { %1239 = vsyncpa [#allocation7 + $0x1], 1 }

</bundles_post_ra>
